<compile_context>
chip_gen: v7x
topology: tpu7x:2x2x1
jax: 0.10.0
libtpu: 0.0.40
codegen_flags: <defaults>
</compile_context>

<pallas_src>
import jax
import jax.numpy as jnp
from jax.experimental import pallas as pl
from jax.experimental.pallas import tpu as pltpu

OUT_PAD = 128  # lane-dense padded width of the final (logical width-1) output


def _leaky_relu(h, slope=0.2):
    return jnp.where(h > 0, h, slope * h)


def _round_up(x, m):
    return -(-x // m) * m


def discriminator_kernel(
    x_ref, z_ref,
    w1x_ref, b1x_ref,             # x_nn layer-1
    w1z_ref, b1z_ref,             # z_nn layer-1
    wfx_ref, wfz_ref, bf_ref,     # folded (w2x@w1xz_top), (w2z@w1xz_bot), folded bias
    w2xz_ref, b2xz_ref,           # xz_nn layer-2 (lane-padded to 128)
    out_ref,
):
    # f32 HBM tiles -> bf16 for the MXU (cast is cheap VPU filler in-kernel).
    x = x_ref[...].astype(jnp.bfloat16)
    z = z_ref[...].astype(jnp.bfloat16)

    h1x = jnp.dot(x, w1x_ref[...], preferred_element_type=jnp.float32) + b1x_ref[...]
    h1x = _leaky_relu(h1x).astype(jnp.bfloat16)                      # [TB,512]
    h1z = jnp.dot(z, w1z_ref[...], preferred_element_type=jnp.float32) + b1z_ref[...]
    h1z = _leaky_relu(h1z).astype(jnp.bfloat16)                      # [TB,512]

    # leaky(cat(h_x, h_z) @ w1xz + b1xz) with the activation-free second
    # Linears of x_nn/z_nn folded into w1xz (done offline in prepare_params).
    h = (jnp.dot(h1x, wfx_ref[...], preferred_element_type=jnp.float32)
         + jnp.dot(h1z, wfz_ref[...], preferred_element_type=jnp.float32)
         + bf_ref[...])
    h = _leaky_relu(h).astype(jnp.bfloat16)                          # [TB,256]

    out_ref[...] = (jnp.dot(h, w2xz_ref[...], preferred_element_type=jnp.float32)
                    + b2xz_ref[...]).astype(out_ref.dtype)           # [TB,128]


def _choose_batch_tile(B, max_batch_tile=512):
    """Batch tile: >=16 (bf16 sublane packing), multiple of 256 once large
    (MXU-native M), and sized so the grid has >=2 steps when possible so the
    'parallel' axis can shard across v7x's two TensorCores."""
    if B <= 16:
        return 16
    tb = _round_up(pl.cdiv(B, 2), 16)
    if tb > 256:
        tb = _round_up(tb, 256)
    return min(tb, max_batch_tile)


def prepare_params(raw):
    """One-time preprocessing of raw f32 params into kernel-ready form.
    Call once (e.g. at init) and reuse across forward calls."""
    w1xz_top = raw["w1xz"][:256]          # consumes the h_x half of the concat
    w1xz_bot = raw["w1xz"][256:]          # consumes the h_z half
    # Fold the activation-free Linear(512->256) pairs into xz_nn's first layer.
    wfx = (raw["w2x"] @ w1xz_top).astype(jnp.bfloat16)               # [512,256]
    wfz = (raw["w2z"] @ w1xz_bot).astype(jnp.bfloat16)               # [512,256]
    bf = raw["b2x"] @ w1xz_top + raw["b2z"] @ w1xz_bot + raw["b1xz"]  # [1,256] f32
    # Lane-pad the final (256->1) layer to 128 output lanes for unmasked stores.
    w2xz_p = jnp.pad(raw["w2xz"],
                     ((0, 0), (0, OUT_PAD - raw["w2xz"].shape[1]))).astype(jnp.bfloat16)
    b2xz_p = jnp.pad(raw["b2xz"], ((0, 0), (0, OUT_PAD - raw["b2xz"].shape[1])))
    return dict(
        w1x=raw["w1x"].astype(jnp.bfloat16), b1x=raw["b1x"],
        w1z=raw["w1z"].astype(jnp.bfloat16), b1z=raw["b1z"],
        wfx=wfx, wfz=wfz, bf=bf,
        w2xz=w2xz_p, b2xz=b2xz_p,
    )


def discriminator_forward(x_flat, z, kp, *, max_batch_tile=512):
    """x_flat: [B, prod(input_size)] f32, z: [B, dim_z] f32, kp: prepare_params(...)
    -> [B, 1] f32."""
    B, d_in = x_flat.shape
    dim_z = z.shape[1]
    tb = _choose_batch_tile(B, max_batch_tile)
    grid = (pl.cdiv(B, tb),)   # partial last block handled by Pallas (masked stores)

    args = (
        x_flat, z,
        kp["w1x"], kp["b1x"],
        kp["w1z"], kp["b1z"],
        kp["wfx"], kp["wfz"], kp["bf"],
        kp["w2xz"], kp["b2xz"],
    )

    in_specs = [
        pl.BlockSpec((tb, d_in), lambda i: (i, 0)),     # x tile
        pl.BlockSpec((tb, dim_z), lambda i: (i, 0)),    # z tile
    ] + [
        # weights / biases: full arrays, same block every step -> VMEM-resident
        pl.BlockSpec(a.shape, lambda i: (0, 0)) for a in args[2:]
    ]
    out_spec = pl.BlockSpec((tb, OUT_PAD), lambda i: (i, 0))

    flops = 2 * B * (d_in * 512 + dim_z * 512 + 2 * 512 * 256 + 256 * OUT_PAD)
    bytes_accessed = (int(x_flat.size) * x_flat.dtype.itemsize
                      + int(z.size) * z.dtype.itemsize
                      + sum(int(a.size) * a.dtype.itemsize for a in args[2:])
                      + B * OUT_PAD * 4)

    out_padded = pl.pallas_call(
        discriminator_kernel,
        out_shape=jax.ShapeDtypeStruct((B, OUT_PAD), jnp.float32),
        grid=grid,
        in_specs=in_specs,
        out_specs=out_spec,
        compiler_params=pltpu.CompilerParams(
            dimension_semantics=("parallel",),
            vmem_limit_bytes=32 * 1024 * 1024),
        cost_estimate=pl.CostEstimate(
            flops=flops, transcendentals=0, bytes_accessed=int(bytes_accessed)),
    )(*args)

    return out_padded[:, :1]


def init_params(key, d_in, dim_z):
    """Raw f32 params mimicking nn.Linear default U(-1/sqrt(fan_in), ...).
    Weights stored as [in, out]; biases as [1, out]."""
    def linear(key, fan_in, fan_out):
        kw, kb = jax.random.split(key)
        bound = 1.0 / (fan_in ** 0.5)
        w = jax.random.uniform(kw, (fan_in, fan_out), jnp.float32, -bound, bound)
        b = jax.random.uniform(kb, (1, fan_out), jnp.float32, -bound, bound)
        return w, b

    keys = jax.random.split(key, 6)
    w1x, b1x = linear(keys[0], d_in, 512)
    w2x, b2x = linear(keys[1], 512, 256)
    w1z, b1z = linear(keys[2], dim_z, 512)
    w2z, b2z = linear(keys[3], 512, 256)
    w1xz, b1xz = linear(keys[4], 512, 256)
    w2xz, b2xz = linear(keys[5], 256, 1)
    return dict(
        w1x=w1x, b1x=b1x, w2x=w2x, b2x=b2x,
        w1z=w1z, b1z=b1z, w2z=w2z, b2z=b2z,
        w1xz=w1xz, b1xz=b1xz, w2xz=w2xz, b2xz=b2xz,
    )


def reference_forward(x_flat, z, p):
    """Pure-JAX f32 reference of the original (unfused) module forward."""
    def mlp(h, w1, b1, w2, b2):
        h1 = h @ w1 + b1
        h1 = jnp.where(h1 > 0, h1, 0.2 * h1)
        return h1 @ w2 + b2
    h_x = mlp(x_flat, p["w1x"], p["b1x"], p["w2x"], p["b2x"])
    h_z = mlp(z, p["w1z"], p["b1z"], p["w2z"], p["b2z"])
    h = jnp.concatenate([h_x, h_z], axis=-1)
    return mlp(h, p["w1xz"], p["b1xz"], p["w2xz"], p["b2xz"])


# TODO(synk): arch_type='cnn' branches (Conv2d / GatedConv2d stacks + dropout)
# are not implemented; only the arch_type='mlp' forward path is covered.

if __name__ == "__main__":
    # Shapes consistent with the mlp branch: input_size=[4,16,16], dim_z=32.
    B = 2
    C, H, W = 4, 16, 16
    dim_z = 32
    d_in = C * H * W  # 1024

    key = jax.random.PRNGKey(0)
    k_x, k_z, k_p = jax.random.split(key, 3)

    x = jax.random.normal(k_x, (B, C, H, W), jnp.float32)   # NCHW input
    x_flat = x.reshape(B, d_in)                              # torch-style .view(B, -1)
    z = jax.random.normal(k_z, (B, dim_z), jnp.float32)

    raw_params = init_params(k_p, d_in, dim_z)
    kernel_params = prepare_params(raw_params)   # one-time prep; reuse every call

    out = discriminator_forward(x_flat, z, kernel_params)
    out = jax.block_until_ready(out)

    ref = reference_forward(x_flat, z, raw_params)
    assert out.shape == (B, 1)
    # bf16 weights/activations on the MXU -> allow small drift vs f32 reference.
    assert jnp.allclose(out, ref, atol=5e-2, rtol=5e-2), (out, ref)

    print("KERNEL_OK")
</pallas_src>

<mosaic_0001>
module attributes {stable_mosaic.version = 11 : i64} {
  func.func @discriminator_kernel(%arg0: i32, %arg1: memref<16x1024xf32, #tpu.memory_space<vmem>>, %arg2: memref<16x32xf32, #tpu.memory_space<vmem>>, %arg3: memref<1024x512xbf16, #tpu.memory_space<vmem>>, %arg4: memref<1x512xf32, #tpu.memory_space<vmem>>, %arg5: memref<32x512xbf16, #tpu.memory_space<vmem>>, %arg6: memref<1x512xf32, #tpu.memory_space<vmem>>, %arg7: memref<512x256xbf16, #tpu.memory_space<vmem>>, %arg8: memref<512x256xbf16, #tpu.memory_space<vmem>>, %arg9: memref<1x256xf32, #tpu.memory_space<vmem>>, %arg10: memref<256x128xbf16, #tpu.memory_space<vmem>>, %arg11: memref<1x128xf32, #tpu.memory_space<vmem>>, %arg12: memref<16x128xf32, #tpu.memory_space<vmem>>) attributes {dimension_semantics = [#tpu.dimension_semantics<parallel>], iteration_bounds = array<i64: 1>, scalar_prefetch = 0 : i64, scratch_operands = 0 : i64, tpu.core_type = #tpu.core_type<tc>, window_params = [{transform_indices = @transform_0, window_bounds = array<i64: 16, 1024>}, {transform_indices = @transform_1, window_bounds = array<i64: 16, 32>}, {pipeline_mode = #tpu.pipeline_mode<synchronous>, transform_indices = @transform_2, window_bounds = array<i64: 1024, 512>}, {pipeline_mode = #tpu.pipeline_mode<synchronous>, transform_indices = @transform_3, window_bounds = array<i64: 1, 512>}, {pipeline_mode = #tpu.pipeline_mode<synchronous>, transform_indices = @transform_4, window_bounds = array<i64: 32, 512>}, {pipeline_mode = #tpu.pipeline_mode<synchronous>, transform_indices = @transform_5, window_bounds = array<i64: 1, 512>}, {pipeline_mode = #tpu.pipeline_mode<synchronous>, transform_indices = @transform_6, window_bounds = array<i64: 512, 256>}, {pipeline_mode = #tpu.pipeline_mode<synchronous>, transform_indices = @transform_7, window_bounds = array<i64: 512, 256>}, {pipeline_mode = #tpu.pipeline_mode<synchronous>, transform_indices = @transform_8, window_bounds = array<i64: 1, 256>}, {pipeline_mode = #tpu.pipeline_mode<synchronous>, transform_indices = @transform_9, window_bounds = array<i64: 256, 128>}, {pipeline_mode = #tpu.pipeline_mode<synchronous>, transform_indices = @transform_10, window_bounds = array<i64: 1, 128>}, {transform_indices = @transform_11, window_bounds = array<i64: 16, 128>}]} {
    %c0 = arith.constant 0 : index
    %c0_0 = arith.constant 0 : index
    %0 = vector.load %arg1[%c0, %c0_0] : memref<16x1024xf32, #tpu.memory_space<vmem>>, vector<16x1024xf32>
    %1 = arith.truncf %0 : vector<16x1024xf32> to vector<16x1024xbf16>
    %c0_1 = arith.constant 0 : index
    %c0_2 = arith.constant 0 : index
    %2 = vector.load %arg2[%c0_1, %c0_2] : memref<16x32xf32, #tpu.memory_space<vmem>>, vector<16x32xf32>
    %3 = arith.truncf %2 : vector<16x32xf32> to vector<16x32xbf16>
    %c0_3 = arith.constant 0 : index
    %c0_4 = arith.constant 0 : index
    %4 = vector.load %arg3[%c0_3, %c0_4] : memref<1024x512xbf16, #tpu.memory_space<vmem>>, vector<1024x512xbf16>
    %cst = arith.constant dense<0.000000e+00> : vector<16x512xf32>
    %5 = tpu.matmul %1, %4, %cst {dimension_numbers = #tpu.dot_dimension_numbers<[1], [0], [0], [1], [0, 0, 1, 1], [], []>} : vector<16x1024xbf16>, vector<1024x512xbf16>, vector<16x512xf32> -> vector<16x512xf32>
    %c0_5 = arith.constant 0 : index
    %c0_6 = arith.constant 0 : index
    %6 = vector.load %arg4[%c0_5, %c0_6] : memref<1x512xf32, #tpu.memory_space<vmem>>, vector<1x512xf32>
    %7 = vector.broadcast %6 : vector<1x512xf32> to vector<16x512xf32>
    %8 = arith.addf %5, %7 : vector<16x512xf32>
    %cst_7 = arith.constant 0.000000e+00 : f32
    %9 = vector.broadcast %cst_7 : f32 to vector<16x512xf32>
    %10 = arith.cmpf ogt, %8, %9 : vector<16x512xf32>
    %cst_8 = arith.constant 2.000000e-01 : f32
    %11 = vector.broadcast %cst_8 : f32 to vector<16x512xf32>
    %12 = arith.mulf %11, %8 : vector<16x512xf32>
    %13 = arith.select %10, %8, %12 : vector<16x512xi1>, vector<16x512xf32>
    %14 = arith.truncf %13 : vector<16x512xf32> to vector<16x512xbf16>
    %c0_9 = arith.constant 0 : index
    %c0_10 = arith.constant 0 : index
    %15 = vector.load %arg5[%c0_9, %c0_10] : memref<32x512xbf16, #tpu.memory_space<vmem>>, vector<32x512xbf16>
    %cst_11 = arith.constant dense<0.000000e+00> : vector<16x512xf32>
    %16 = tpu.matmul %3, %15, %cst_11 {dimension_numbers = #tpu.dot_dimension_numbers<[1], [0], [0], [1], [0, 0, 1, 1], [], []>} : vector<16x32xbf16>, vector<32x512xbf16>, vector<16x512xf32> -> vector<16x512xf32>
    %c0_12 = arith.constant 0 : index
    %c0_13 = arith.constant 0 : index
    %17 = vector.load %arg6[%c0_12, %c0_13] : memref<1x512xf32, #tpu.memory_space<vmem>>, vector<1x512xf32>
    %18 = vector.broadcast %17 : vector<1x512xf32> to vector<16x512xf32>
    %19 = arith.addf %16, %18 : vector<16x512xf32>
    %cst_14 = arith.constant 0.000000e+00 : f32
    %20 = vector.broadcast %cst_14 : f32 to vector<16x512xf32>
    %21 = arith.cmpf ogt, %19, %20 : vector<16x512xf32>
    %cst_15 = arith.constant 2.000000e-01 : f32
    %22 = vector.broadcast %cst_15 : f32 to vector<16x512xf32>
    %23 = arith.mulf %22, %19 : vector<16x512xf32>
    %24 = arith.select %21, %19, %23 : vector<16x512xi1>, vector<16x512xf32>
    %25 = arith.truncf %24 : vector<16x512xf32> to vector<16x512xbf16>
    %c0_16 = arith.constant 0 : index
    %c0_17 = arith.constant 0 : index
    %26 = vector.load %arg7[%c0_16, %c0_17] : memref<512x256xbf16, #tpu.memory_space<vmem>>, vector<512x256xbf16>
    %cst_18 = arith.constant dense<0.000000e+00> : vector<16x256xf32>
    %27 = tpu.matmul %14, %26, %cst_18 {dimension_numbers = #tpu.dot_dimension_numbers<[1], [0], [0], [1], [0, 0, 1, 1], [], []>} : vector<16x512xbf16>, vector<512x256xbf16>, vector<16x256xf32> -> vector<16x256xf32>
    %c0_19 = arith.constant 0 : index
    %c0_20 = arith.constant 0 : index
    %28 = vector.load %arg8[%c0_19, %c0_20] : memref<512x256xbf16, #tpu.memory_space<vmem>>, vector<512x256xbf16>
    %cst_21 = arith.constant dense<0.000000e+00> : vector<16x256xf32>
    %29 = tpu.matmul %25, %28, %cst_21 {dimension_numbers = #tpu.dot_dimension_numbers<[1], [0], [0], [1], [0, 0, 1, 1], [], []>} : vector<16x512xbf16>, vector<512x256xbf16>, vector<16x256xf32> -> vector<16x256xf32>
    %30 = arith.addf %27, %29 : vector<16x256xf32>
    %c0_22 = arith.constant 0 : index
    %c0_23 = arith.constant 0 : index
    %31 = vector.load %arg9[%c0_22, %c0_23] : memref<1x256xf32, #tpu.memory_space<vmem>>, vector<1x256xf32>
    %32 = vector.broadcast %31 : vector<1x256xf32> to vector<16x256xf32>
    %33 = arith.addf %30, %32 : vector<16x256xf32>
    %cst_24 = arith.constant 0.000000e+00 : f32
    %34 = vector.broadcast %cst_24 : f32 to vector<16x256xf32>
    %35 = arith.cmpf ogt, %33, %34 : vector<16x256xf32>
    %cst_25 = arith.constant 2.000000e-01 : f32
    %36 = vector.broadcast %cst_25 : f32 to vector<16x256xf32>
    %37 = arith.mulf %36, %33 : vector<16x256xf32>
    %38 = arith.select %35, %33, %37 : vector<16x256xi1>, vector<16x256xf32>
    %39 = arith.truncf %38 : vector<16x256xf32> to vector<16x256xbf16>
    %c0_26 = arith.constant 0 : index
    %c0_27 = arith.constant 0 : index
    %40 = vector.load %arg10[%c0_26, %c0_27] : memref<256x128xbf16, #tpu.memory_space<vmem>>, vector<256x128xbf16>
    %cst_28 = arith.constant dense<0.000000e+00> : vector<16x128xf32>
    %41 = tpu.matmul %39, %40, %cst_28 {dimension_numbers = #tpu.dot_dimension_numbers<[1], [0], [0], [1], [0, 0, 1, 1], [], []>} : vector<16x256xbf16>, vector<256x128xbf16>, vector<16x128xf32> -> vector<16x128xf32>
    %c0_29 = arith.constant 0 : index
    %c0_30 = arith.constant 0 : index
    %42 = vector.load %arg11[%c0_29, %c0_30] : memref<1x128xf32, #tpu.memory_space<vmem>>, vector<1x128xf32>
    %43 = vector.broadcast %42 : vector<1x128xf32> to vector<16x128xf32>
    %44 = arith.addf %41, %43 : vector<16x128xf32>
    %c0_31 = arith.constant 0 : index
    %c0_32 = arith.constant 0 : index
    %45 = vector.load %arg12[%c0_31, %c0_32] : memref<16x128xf32, #tpu.memory_space<vmem>>, vector<16x128xf32>
    tpu.vector_store %arg12[%c0_31, %c0_32], %44 {strides = array<i32>} : memref<16x128xf32, #tpu.memory_space<vmem>>, vector<16x128xf32>,
    return
  }
  func.func @transform_0(%arg0: i32) -> (i32, i32) {
    %c0_i32 = arith.constant 0 : i32
    %c0_i32_0 = arith.constant 0 : i32
    return %arg0, %c0_i32 : i32, i32
  }
  func.func @transform_1(%arg0: i32) -> (i32, i32) {
    %c0_i32 = arith.constant 0 : i32
    %c0_i32_0 = arith.constant 0 : i32
    return %arg0, %c0_i32 : i32, i32
  }
  func.func @transform_2(%arg0: i32) -> (i32, i32) {
    %c0_i32 = arith.constant 0 : i32
    %c0_i32_0 = arith.constant 0 : i32
    %c0_i32_1 = arith.constant 0 : i32
    return %c0_i32, %c0_i32_0 : i32, i32
  }
  func.func @transform_3(%arg0: i32) -> (i32, i32) {
    %c0_i32 = arith.constant 0 : i32
    %c0_i32_0 = arith.constant 0 : i32
    %c0_i32_1 = arith.constant 0 : i32
    return %c0_i32, %c0_i32_0 : i32, i32
  }
  func.func @transform_4(%arg0: i32) -> (i32, i32) {
    %c0_i32 = arith.constant 0 : i32
    %c0_i32_0 = arith.constant 0 : i32
    %c0_i32_1 = arith.constant 0 : i32
    return %c0_i32, %c0_i32_0 : i32, i32
  }
  func.func @transform_5(%arg0: i32) -> (i32, i32) {
    %c0_i32 = arith.constant 0 : i32
    %c0_i32_0 = arith.constant 0 : i32
    %c0_i32_1 = arith.constant 0 : i32
    return %c0_i32, %c0_i32_0 : i32, i32
  }
  func.func @transform_6(%arg0: i32) -> (i32, i32) {
    %c0_i32 = arith.constant 0 : i32
    %c0_i32_0 = arith.constant 0 : i32
    %c0_i32_1 = arith.constant 0 : i32
    return %c0_i32, %c0_i32_0 : i32, i32
  }
  func.func @transform_7(%arg0: i32) -> (i32, i32) {
    %c0_i32 = arith.constant 0 : i32
    %c0_i32_0 = arith.constant 0 : i32
    %c0_i32_1 = arith.constant 0 : i32
    return %c0_i32, %c0_i32_0 : i32, i32
  }
  func.func @transform_8(%arg0: i32) -> (i32, i32) {
    %c0_i32 = arith.constant 0 : i32
    %c0_i32_0 = arith.constant 0 : i32
    %c0_i32_1 = arith.constant 0 : i32
    return %c0_i32, %c0_i32_0 : i32, i32
  }
  func.func @transform_9(%arg0: i32) -> (i32, i32) {
    %c0_i32 = arith.constant 0 : i32
    %c0_i32_0 = arith.constant 0 : i32
    %c0_i32_1 = arith.constant 0 : i32
    return %c0_i32, %c0_i32_0 : i32, i32
  }
  func.func @transform_10(%arg0: i32) -> (i32, i32) {
    %c0_i32 = arith.constant 0 : i32
    %c0_i32_0 = arith.constant 0 : i32
    %c0_i32_1 = arith.constant 0 : i32
    return %c0_i32, %c0_i32_0 : i32, i32
  }
  func.func @transform_11(%arg0: i32) -> (i32, i32) {
    %c0_i32 = arith.constant 0 : i32
    %c0_i32_0 = arith.constant 0 : i32
    return %arg0, %c0_i32 : i32, i32
  }
}

</mosaic_0001>

<bundles_post_ra>
// kernel: tpu_custom_call.1
= control target key start
LH: loop header
LB: loop body
LE: loop exit
PB: predicated region body
PF: predicated region fallthrough
CT: control target
= control target key end

     0   :  { %16 = vsyncpa [#allocation3], 0  ;;  %s5271_s0 = inlined_call_operand.hbm [shape: f32[2,1024], index: 0, kind: input, shape index: {}]   ;;  %s5272_s1 = inlined_call_operand.vmem [shape: f32[2,32], index: 1, kind: input, shape index: {}]   ;;  %s5273_s2 = inlined_call_operand.hbm [shape: bf16[1024,512], index: 2, kind: input, shape index: {}]   ;;  %s5274_s3 = inlined_call_operand.vmem [shape: f32[1,512], index: 3, kind: input, shape index: {}]   ;;  %s5275_s4 = inlined_call_operand.hbm [shape: bf16[32,512], index: 4, kind: input, shape index: {}]   ;;  %s5276_s5 = inlined_call_operand.vmem [shape: f32[1,512], index: 5, kind: input, shape index: {}]   ;;  %s5277_s6 = inlined_call_operand.hbm [shape: bf16[512,256], index: 6, kind: input, shape index: {}]   ;;  %s5278_s7 = inlined_call_operand.hbm [shape: bf16[512,256], index: 7, kind: input, shape index: {}]   ;;  %s5279_s8 = inlined_call_operand.vmem [shape: f32[1,256], index: 8, kind: input, shape index: {}]   ;;  %s5280_s9 = inlined_call_operand.hbm [shape: bf16[256,128], index: 9, kind: input, shape index: {}]   ;;  %s5281_s10 = inlined_call_operand.vmem [shape: f32[1,128], index: 10, kind: input, shape index: {}]   ;;  %s5282_s11 = inlined_call_operand.hbm [shape: f32[2,128], index: 11, kind: output, shape index: {}]  }
   0x1   :  { %17 = vsyncpa [#allocation6], 0 }
   0x2   :  { %18 = vsyncpa [#allocation9], 0 }
   0x3   :  { %19 = vsyncpa [#allocation12], 0 }
   0x4   :  { %20 = vsyncpa [#allocation4], 0 }
   0x5   :  { %25 = vsyncadd [#allocation3], 1792  ;;  %s4897_s17 = smov [#allocation5]   ;;  %s4898_s19 = smov [#allocation8]  }
   0x6   :  { %s40_s18 = sshll.u32 %s4897_s17, 4  ;;  %s68_s20 = sshll.u32 %s4898_s19, 4  ;;  %s41_s18 = int_to_ptr.vmem [resolvable:$true] %s40_s18  ;;  %s4974_s20 = int_to_ptr.vmem [resolvable:$true] %s68_s20 }
   0x7   :  { %s4733_s23 = scalar_lea.hbm %s5273_s2, 32768 }
   0x8   :  { %p4734_p0 = scmp.ne.s32.totalorder %s5273_s2, %s4733_s23  ;;  %p4737_p1 = scmp.lt.u32.totalorder %s4733_s23, %s5273_s2 }
   0xa   :  { %p4739_p2 = pnand %p4737_p1, %p4734_p0 }
   0xc   :  { %4742 = shalt.err (!%p4739_p2)
}
   0xd   :  { %s4743_s28 = scalar_lea.vmem %s41_s18, 32768  ;;  %p4748_p4 = scmp.lt.s32.totalorder %s41_s18, %s41_s18 }
   0xe   :  { %p4744_p3 = scmp.ne.s32.totalorder %s41_s18, %s4743_s28  ;;  %p4749_p5 = scmp.lt.s32.totalorder %s4743_s28, %s4743_s28 }
  0x10   :  { %p4750_p6 = por %p4749_p5, %p4748_p4 }
  0x12   :  { %p4751_p7 = pnand %p4750_p6, %p4744_p3 }
  0x14   :  { %4754 = shalt.err (!%p4751_p7)
}
  0x15   :  { %s4899_s29 = smov 256   ;;  %s4900_s30 = smov 16  }
  0x16   :  { %46 = dma.hbm_to_vmem [thread:$0]  %s5273_s2, 32768, %s41_s18, [#allocation6], %s4899_s29, %s4899_s29, %s4900_s30  }
  0x17   :  { %s4755_s16 = scalar_lea.hbm %s5277_s6, 8192 }
  0x18   :  { %p4756_p8 = scmp.ne.s32.totalorder %s5277_s6, %s4755_s16  ;;  %p4759_p9 = scmp.lt.u32.totalorder %s4755_s16, %s5277_s6 }
  0x1a   :  { %p4761_p10 = pnand %p4759_p9, %p4756_p8 }
  0x1c   :  { %4764 = shalt.err (!%p4761_p10)
}
  0x1d   :  { %s4765_s23 = scalar_lea.vmem %s4974_s20, 8192  ;;  %p4770_p12 = scmp.lt.s32.totalorder %s4974_s20, %s4974_s20 }
  0x1e   :  { %p4766_p11 = scmp.ne.s32.totalorder %s4974_s20, %s4765_s23  ;;  %p4771_p13 = scmp.lt.s32.totalorder %s4765_s23, %s4765_s23 }
  0x20   :  { %p4772_p0 = por %p4771_p13, %p4770_p12 }
  0x22   :  { %p4773_p1 = pnand %p4772_p0, %p4766_p11 }
  0x24   :  { %4776 = shalt.err (!%p4773_p1)
}
  0x25   :  { %s4901_s2 = smov 128   ;;  %s4902_s18 = smov 8  }
  0x26   :  { %74 = dma.hbm_to_vmem [thread:$0]  %s5277_s6, 8192, %s4974_s20, [#allocation9], %s4901_s2, %s4901_s2, %s4902_s18  }
  0x27   :  { %s4903_s26 = smov [#allocation2]   ;;  %s4904_s28 = smov [#allocation7]  }
  0x28   :  { %s26_s27 = sshll.u32 %s4903_s26, 4  ;;  %s54_s12 = sshll.u32 %s4904_s28, 4  ;;  %s27_s27 = int_to_ptr.vmem [resolvable:$true] %s26_s27  ;;  %s5011_s12 = int_to_ptr.vmem [resolvable:$true] %s54_s12 }
  0x29   :  { %s4777_s15 = scalar_lea.hbm %s5271_s0, 256 }
  0x2a   :  { %p4778_p2 = scmp.ne.s32.totalorder %s5271_s0, %s4777_s15  ;;  %p4781_p3 = scmp.lt.u32.totalorder %s4777_s15, %s5271_s0 }
  0x2c   :  { %p4783_p4 = pnand %p4781_p3, %p4778_p2 }
  0x2e   :  { %4786 = shalt.err (!%p4783_p4)
}
  0x2f   :  { %s4787_s6 = scalar_lea.vmem %s27_s27, 256  ;;  %s4791_s20 = scalar_lea.vmem %s27_s27, 2048 }
  0x30   :  { %p4788_p5 = scmp.ne.s32.totalorder %s27_s27, %s4787_s6  ;;  %p4792_p6 = scmp.lt.s32.totalorder %s27_s27, %s27_s27 }
  0x31   :  { %p4793_p7 = scmp.lt.s32.totalorder %s4791_s20, %s4787_s6 }
  0x33   :  { %p4794_p8 = por %p4793_p7, %p4792_p6 }
  0x35   :  { %p4795_p9 = pnand %p4794_p8, %p4788_p5 }
  0x37   :  { %4798 = shalt.err (!%p4795_p9)
}
  0x38   :  { %32 = dma.hbm_to_vmem [thread:$0]  %s5271_s0, 256, %s27_s27, [#allocation3], %s4899_s29, %s4899_s29, %s4900_s30  }
  0x39   :  { %s4799_s26 = scalar_lea.hbm %s5275_s4, 1024 }
  0x3a   :  { %p4800_p10 = scmp.ne.s32.totalorder %s5275_s4, %s4799_s26  ;;  %p4803_p11 = scmp.lt.u32.totalorder %s4799_s26, %s5275_s4 }
  0x3c   :  { %p4805_p12 = pnand %p4803_p11, %p4800_p10 }
  0x3e   :  { %4808 = shalt.err (!%p4805_p12)
}
  0x3f   :  { %s4809_s16 = scalar_lea.vmem %s5011_s12, 1024  ;;  %p4814_p0 = scmp.lt.s32.totalorder %s5011_s12, %s5011_s12 }
  0x40   :  { %p4810_p13 = scmp.ne.s32.totalorder %s5011_s12, %s4809_s16  ;;  %p4815_p1 = scmp.lt.s32.totalorder %s4809_s16, %s4809_s16 }
  0x42   :  { %p4816_p2 = por %p4815_p1, %p4814_p0 }
  0x44   :  { %p4817_p3 = pnand %p4816_p2, %p4810_p13 }
  0x46   :  { %4820 = shalt.err (!%p4817_p3)
}
  0x47   :  { %60 = dma.hbm_to_vmem [thread:$0]  %s5275_s4, 1024, %s5011_s12, [#allocation6], %s4899_s29, %s4899_s29, %s4900_s30  }
  0x48   :  { %s4905_s17 = smov [#allocation10]   ;;  %s4906_s21 = smov [#allocation11]  }
  0x49   :  { %s80_s19 = sshll.u32 %s4905_s17, 4  ;;  %s94_s6 = sshll.u32 %s4906_s21, 4  ;;  %s81_s19 = int_to_ptr.vmem [resolvable:$true] %s80_s19  ;;  %s5048_s6 = int_to_ptr.vmem [resolvable:$true] %s94_s6 }
  0x4a   :  { %s4821_s23 = scalar_lea.hbm %s5278_s7, 8192 }
  0x4b   :  { %p4822_p4 = scmp.ne.s32.totalorder %s5278_s7, %s4821_s23  ;;  %p4825_p5 = scmp.lt.u32.totalorder %s4821_s23, %s5278_s7 }
  0x4d   :  { %p4827_p6 = pnand %p4825_p5, %p4822_p4 }
  0x4f   :  { %4830 = shalt.err (!%p4827_p6)
}
  0x50   :  { %s4831_s4 = scalar_lea.vmem %s81_s19, 8192  ;;  %p4836_p8 = scmp.lt.s32.totalorder %s81_s19, %s81_s19 }
  0x51   :  { %p4832_p7 = scmp.ne.s32.totalorder %s81_s19, %s4831_s4  ;;  %p4837_p9 = scmp.lt.s32.totalorder %s4831_s4, %s4831_s4 }
  0x53   :  { %p4838_p10 = por %p4837_p9, %p4836_p8 }
  0x55   :  { %p4839_p11 = pnand %p4838_p10, %p4832_p7 }
  0x57   :  { %4842 = shalt.err (!%p4839_p11)
}
  0x58   :  { %86 = dma.hbm_to_vmem [thread:$0]  %s5278_s7, 8192, %s81_s19, [#allocation9], %s4901_s2, %s4901_s2, %s4902_s18  }
  0x59   :  { %s4843_s14 = scalar_lea.hbm %s5280_s9, 2048 }
  0x5a   :  { %p4844_p12 = scmp.ne.s32.totalorder %s5280_s9, %s4843_s14  ;;  %p4847_p13 = scmp.lt.u32.totalorder %s4843_s14, %s5280_s9 }
  0x5c   :  { %p4849_p0 = pnand %p4847_p13, %p4844_p12 }
  0x5e   :  { %4852 = shalt.err (!%p4849_p0)
}
  0x5f   :  { %s4853_s17 = scalar_lea.vmem %s5048_s6, 2048  ;;  %p4858_p2 = scmp.lt.s32.totalorder %s5048_s6, %s5048_s6 }
  0x60   :  { %p4854_p1 = scmp.ne.s32.totalorder %s5048_s6, %s4853_s17  ;;  %p4859_p3 = scmp.lt.s32.totalorder %s4853_s17, %s4853_s17 }
  0x62   :  { %p4860_p4 = por %p4859_p3, %p4858_p2 }
  0x64   :  { %p4861_p5 = pnand %p4860_p4, %p4854_p1 }
  0x66   :  { %4864 = shalt.err (!%p4861_p5)
}
  0x67   :  { %s4907_s7 = smov 64   ;;  %s4908_s2 = smov 4  }
  0x68   :  { %100 = dma.hbm_to_vmem [thread:$0]  %s5280_s9, 2048, %s5048_s6, [#allocation12], %s4907_s7, %s4907_s7, %s4908_s2  }
  0x69   :  { %4887 = dma.done.wait [#allocation3], 2048  }
  0x6a   :  { %4888 = vsyncadd [#allocation3], 4294965248 }
  0x6b   :  { %4889 = dma.done.wait [#allocation6], 33792  }
  0x6c   :  { %4890 = vsyncadd [#allocation6], 4294933504 }
  0x6d   :  { %4891 = dma.done.wait [#allocation9], 16384  }
  0x6e   :  { %4892 = vsyncadd [#allocation9], 4294950912 }
  0x6f   :  { %4893 = dma.done.wait [#allocation12], 2048  }
  0x70   :  { %4894 = vsyncadd [#allocation12], 4294965248  ;;  %v4105_v0 = vld [vmem:[#allocation5 + $0x4] ss:$16 sps:$4 sm:$0xff]   ;;  %v4109_v2 = vld [vmem:[#allocation5] ss:$16 sps:$4 sm:$0xff]   ;;  %v161_v41 = vlaneseq }
  0x71   :  { %v4107_v1 = vld [vmem:[#allocation5 + $0x404] ss:$16 sps:$4 sm:$0xff]   ;;  %1883 = vmatprep.subr.bf16.mxu1 %v4105_v0  ;;  %v4110_v3 = vld [vmem:[#allocation5 + $0x400] ss:$16 sps:$4 sm:$0xff]   ;;  %v4909_v39 = vmov 1983009808  }
  0x72   :  { %1969 = vmatprep.subr.bf16.mxu0 %v4107_v1  ;;  %v4111_v4 = vld [vmem:[#allocation5 + $0x24] ss:$16 sps:$4 sm:$0xff]   ;;  %1884 = vmatpush1.bf16.msra.mxu1 %v4109_v2  ;;  %v4115_v6 = vld [vmem:[#allocation5 + $0x20] ss:$16 sps:$4 sm:$0xff]   ;;  %v159_v40 = vunpack.c.l.s4 %v4909_v39  ;;  %v5082_v48 = vshrl.u32 %v161_v41, 7  ;;  %vm2325_vm0 = vcmask 261120  }
  0x73   :  { %1970 = vmatpush1.bf16.msra.mxu0 %v4110_v3  ;;  %v4113_v5 = vld [vmem:[#allocation5 + $0x424] ss:$16 sps:$4 sm:$0xff]   ;;  %1885 = vmatprep.subr.bf16.mxu1 %v4111_v4  ;;  %v4116_v7 = vld [vmem:[#allocation5 + $0x420] ss:$16 sps:$4 sm:$0xff]  }
  0x74   :  { %1971 = vmatprep.subr.bf16.mxu0 %v4113_v5  ;;  %v4117_v8 = vld [vmem:[#allocation5 + $0x44] ss:$16 sps:$4 sm:$0xff]   ;;  %v4121_v10 = vld [vmem:[#allocation5 + $0x40] ss:$16 sps:$4 sm:$0xff]   ;;  %v160_v47 = vunpack.c.0.s8 %v159_v40 }
  0x75   :  { %v4119_v9 = vld [vmem:[#allocation5 + $0x444] ss:$16 sps:$4 sm:$0xff]   ;;  %v4122_v11 = vld [vmem:[#allocation5 + $0x440] ss:$16 sps:$4 sm:$0xff]  }
  0x76   :  { %1886 = vmatpush1.bf16.msra.mxu1 %v4115_v6  ;;  %v4123_v12 = vld [vmem:[#allocation5 + $0x64] ss:$16 sps:$4 sm:$0xff]   ;;  %v4127_v14 = vld [vmem:[#allocation5 + $0x60] ss:$16 sps:$4 sm:$0xff]   ;;  %v5085_v54 = vsub.s32 %v160_v47, %v5082_v48 }
  0x77   :  { %1972 = vmatpush1.bf16.msra.mxu0 %v4116_v7  ;;  %1887 = vmatprep.subr.bf16.mxu1 %v4117_v8  ;;  %v4125_v13 = vld [vmem:[#allocation5 + $0x464] ss:$16 sps:$4 sm:$0xff]   ;;  %v4128_v15 = vld [vmem:[#allocation5 + $0x460] ss:$16 sps:$4 sm:$0xff]  }
  0x78   :  { %1973 = vmatprep.subr.bf16.mxu0 %v4119_v9  ;;  %v4129_v16 = vld [vmem:[#allocation5 + $0x84] ss:$16 sps:$4 sm:$0xff]   ;;  %v4133_v18 = vld [vmem:[#allocation5 + $0x80] ss:$16 sps:$4 sm:$0xff]  }
  0x79   :  { %v4131_v17 = vld [vmem:[#allocation5 + $0x484] ss:$16 sps:$4 sm:$0xff]   ;;  %v4134_v19 = vld [vmem:[#allocation5 + $0x480] ss:$16 sps:$4 sm:$0xff]  }
  0x7a   :  { %1888 = vmatpush1.bf16.msra.mxu1 %v4121_v10  ;;  %v4135_v20 = vld [vmem:[#allocation5 + $0xa4] ss:$16 sps:$4 sm:$0xff]   ;;  %v4139_v22 = vld [vmem:[#allocation5 + $0xa0] ss:$16 sps:$4 sm:$0xff]  }
  0x7b   :  { %1974 = vmatpush1.bf16.msra.mxu0 %v4122_v11  ;;  %1889 = vmatprep.subr.bf16.mxu1 %v4123_v12  ;;  %v4137_v21 = vld [vmem:[#allocation5 + $0x4a4] ss:$16 sps:$4 sm:$0xff]   ;;  %v4140_v23 = vld [vmem:[#allocation5 + $0x4a0] ss:$16 sps:$4 sm:$0xff]  }
  0x7c   :  { %1975 = vmatprep.subr.bf16.mxu0 %v4125_v13  ;;  %v4141_v24 = vld [vmem:[#allocation5 + $0xc4] ss:$16 sps:$4 sm:$0xff]   ;;  %v4145_v26 = vld [vmem:[#allocation5 + $0xc0] ss:$16 sps:$4 sm:$0xff]  }
  0x7d   :  { %v4143_v25 = vld [vmem:[#allocation5 + $0x4c4] ss:$16 sps:$4 sm:$0xff]   ;;  %v4146_v27 = vld [vmem:[#allocation5 + $0x4c0] ss:$16 sps:$4 sm:$0xff]  }
  0x7e   :  { %1890 = vmatpush1.bf16.msra.mxu1 %v4127_v14  ;;  %v4147_v28 = vld [vmem:[#allocation5 + $0xe4] ss:$16 sps:$4 sm:$0xff]   ;;  %v4151_v30 = vld [vmem:[#allocation5 + $0xe0] ss:$16 sps:$4 sm:$0xff]   ;;  %v4216_v14 = vld [vmem:[#allocation2 + $0x8] ss:$16 sps:$4 sm:$0xff]  }
  0x7f   :  { %1976 = vmatpush1.bf16.msra.mxu0 %v4128_v15  ;;  %1891 = vmatprep.subr.bf16.mxu1 %v4129_v16  ;;  %v4149_v29 = vld [vmem:[#allocation5 + $0x4e4] ss:$16 sps:$4 sm:$0xff]   ;;  %v4152_v31 = vld [vmem:[#allocation5 + $0x4e0] ss:$16 sps:$4 sm:$0xff]   ;;  %v4218_v15 = vld [vmem:[#allocation2 + $0xc] ss:$16 sps:$4 sm:$0xff]  }
  0x80   :  { %1977 = vmatprep.subr.bf16.mxu0 %v4131_v17  ;;  %v4153_v32 = vld [vmem:[#allocation5 + $0x104] ss:$16 sps:$4 sm:$0xff]   ;;  %v4157_v34 = vld [vmem:[#allocation5 + $0x100] ss:$16 sps:$4 sm:$0xff]   ;;  %v4219_v16 = vld [vmem:[#allocation2 + $0x28] ss:$16 sps:$4 sm:$0xff]  }
  0x81   :  { %v4155_v33 = vld [vmem:[#allocation5 + $0x504] ss:$16 sps:$4 sm:$0xff]   ;;  %v4158_v35 = vld [vmem:[#allocation5 + $0x500] ss:$16 sps:$4 sm:$0xff]  }
  0x82   :  { %1892 = vmatpush1.bf16.msra.mxu1 %v4133_v18  ;;  %v4159_v36 = vld [vmem:[#allocation5 + $0x124] ss:$16 sps:$4 sm:$0xff]   ;;  %v4163_v38 = vld [vmem:[#allocation5 + $0x120] ss:$16 sps:$4 sm:$0xff]   ;;  %v4221_v18 = vld [vmem:[#allocation2 + $0x2c] ss:$16 sps:$4 sm:$0xff]  }
  0x83   :  { %1978 = vmatpush1.bf16.msra.mxu0 %v4134_v19  ;;  %1893 = vmatprep.subr.bf16.mxu1 %v4135_v20  ;;  %v4161_v37 = vld [vmem:[#allocation5 + $0x524] ss:$16 sps:$4 sm:$0xff]   ;;  %v4164_v42 = vld [vmem:[#allocation5 + $0x520] ss:$16 sps:$4 sm:$0xff]   ;;  %v4222_v19 = vld [vmem:[#allocation2 + $0x48] ss:$16 sps:$4 sm:$0xff]  }
  0x84   :  { %1979 = vmatprep.subr.bf16.mxu0 %v4137_v21  ;;  %v4165_v43 = vld [vmem:[#allocation5 + $0x144] ss:$16 sps:$4 sm:$0xff]   ;;  %v4169_v45 = vld [vmem:[#allocation5 + $0x140] ss:$16 sps:$4 sm:$0xff]   ;;  %v4224_v20 = vld [vmem:[#allocation2 + $0x4c] ss:$16 sps:$4 sm:$0xff]   ;;  %v200_v21 = vrot.slane %v4216_v14, %v5085_v54 }
  0x85   :  { %v4167_v44 = vld [vmem:[#allocation5 + $0x544] ss:$16 sps:$4 sm:$0xff]   ;;  %v4170_v46 = vld [vmem:[#allocation5 + $0x540] ss:$16 sps:$4 sm:$0xff]   ;;  %v5129_v39 = vrot.slane %v4224_v20, %v5085_v54 }
  0x86   :  { %1894 = vmatpush1.bf16.msra.mxu1 %v4139_v22  ;;  %v4171_v49 = vld [vmem:[#allocation5 + $0x164] ss:$16 sps:$4 sm:$0xff]   ;;  %v4175_v51 = vld [vmem:[#allocation5 + $0x160] ss:$16 sps:$4 sm:$0xff]   ;;  %v214_v22 = vrot.slane %v4219_v16, %v5085_v54 }
  0x87   :  { %1980 = vmatpush1.bf16.msra.mxu0 %v4140_v23  ;;  %1895 = vmatprep.subr.bf16.mxu1 %v4141_v24  ;;  %v4173_v50 = vld [vmem:[#allocation5 + $0x564] ss:$16 sps:$4 sm:$0xff]   ;;  %v4176_v52 = vld [vmem:[#allocation5 + $0x560] ss:$16 sps:$4 sm:$0xff]   ;;  %v4225_v23 = vld [vmem:[#allocation2 + $0x68] ss:$16 sps:$4 sm:$0xff]  }
  0x88   :  { %1981 = vmatprep.subr.bf16.mxu0 %v4143_v25  ;;  %v4177_v53 = vld [vmem:[#allocation5 + $0x184] ss:$16 sps:$4 sm:$0xff]   ;;  %v4201_v56 = vld [vmem:[#allocation2] ss:$16 sps:$4 sm:$0xff]   ;;  %v4227_v24 = vld [vmem:[#allocation2 + $0x6c] ss:$16 sps:$4 sm:$0xff]  }
  0x89   :  { %v4179_v55 = vld [vmem:[#allocation5 + $0x584] ss:$16 sps:$4 sm:$0xff]   ;;  %v4181_v57 = vld [vmem:[#allocation5 + $0x180] ss:$16 sps:$4 sm:$0xff]   ;;  %v5088_v62 = vrot.slane %v4201_v56, %v5085_v54  ;;  %v5132_v40 = vrot.slane %v4227_v24, %v5085_v54 }
  0x8a   :  { %1896 = vmatpush1.bf16.msra.mxu1 %v4145_v26  ;;  %v4204_v58 = vld [vmem:[#allocation2 + $0x20] ss:$16 sps:$4 sm:$0xff]   ;;  %v4183_v61 = vld [vmem:[#allocation5 + $0x1a4] ss:$16 sps:$4 sm:$0xff]  }
  0x8b   :  { %1982 = vmatpush1.bf16.msra.mxu0 %v4146_v27  ;;  %1897 = vmatprep.subr.bf16.mxu1 %v4147_v28  ;;  %v4207_v59 = vld [vmem:[#allocation2 + $0x40] ss:$16 sps:$4 sm:$0xff]   ;;  %v4185_v0 = vld [vmem:[#allocation5 + $0x5a4] ss:$16 sps:$4 sm:$0xff]   ;;  %v5091_v1 = vrot.slane %v4204_v58, %v5085_v54  ;;  %v272_v27 = vrot.slane %v4222_v19, %v5085_v54 }
  0x8c   :  { %1983 = vmatprep.subr.bf16.mxu0 %v4149_v29  ;;  %v4182_v60 = vld [vmem:[#allocation5 + $0x580] ss:$16 sps:$4 sm:$0xff]   ;;  %v5094_v2 = vrot.slane %v4207_v59, %v5085_v54  ;;  %v4203_v3 = vld [vmem:[#allocation2 + $0x4] ss:$16 sps:$4 sm:$0xff]  }
  0x8d   :  { %v4210_v63 = vld [vmem:[#allocation2 + $0x60] ss:$16 sps:$4 sm:$0xff]   ;;  %v4206_v7 = vld [vmem:[#allocation2 + $0x24] ss:$16 sps:$4 sm:$0xff]   ;;  %v187_v8 = vcombine.high %v5088_v62, %v5091_v1  ;;  %v5110_v28 = vrot.slane %v4203_v3, %v5085_v54 }
  0x8e   :  { %1898 = vmatpush1.bf16.msra.mxu1 %v4151_v30  ;;  %v5097_v4 = vrot.slane %v4210_v63, %v5085_v54  ;;  %v4187_v5 = vld [vmem:[#allocation5 + $0x1a0] ss:$16 sps:$4 sm:$0xff]   ;;  %v4189_v9 = vld [vmem:[#allocation5 + $0x1c4] ss:$16 sps:$4 sm:$0xff]   ;;  %v223_v30 = vcombine.high %v200_v21, %v214_v22 }
  0x8f   :  { %1984 = vmatpush1.bf16.msra.mxu0 %v4152_v31  ;;  %1899 = vmatprep.subr.bf16.mxu1 %v4153_v32  ;;  %v4188_v6 = vld [vmem:[#allocation5 + $0x5a0] ss:$16 sps:$4 sm:$0xff]   ;;  %v4191_v10 = vld [vmem:[#allocation5 + $0x5c4] ss:$16 sps:$4 sm:$0xff]   ;;  %v286_v31 = vrot.slane %v4225_v23, %v5085_v54  ;;  %v5114_v32 = vrot.slane %v4206_v7, %v5085_v54 }
  0x90   :  { %1985 = vmatprep.subr.bf16.mxu0 %v4155_v33  ;;  %v4209_v11 = vld [vmem:[#allocation2 + $0x44] ss:$16 sps:$4 sm:$0xff]   ;;  %v259_v13 = vcombine.high %v5094_v2, %v5097_v4  ;;  %v4193_v25 = vld [vmem:[#allocation5 + $0x1c0] ss:$16 sps:$4 sm:$0xff]  }
  0x91   :  { %v4212_v12 = vld [vmem:[#allocation2 + $0x64] ss:$16 sps:$4 sm:$0xff]   ;;  %v4194_v26 = vld [vmem:[#allocation5 + $0x5c0] ss:$16 sps:$4 sm:$0xff]  }
  0x92   :  { %1900 = vmatpush1.bf16.msra.mxu1 %v4157_v34  ;;  %v5103_v17 = vpack.c.bf16 %v259_v13, %v187_v8  ;;  %v4195_v29 = vld [vmem:[#allocation5 + $0x1e4] ss:$16 sps:$4 sm:$0xff]   ;;  %v5117_v34 = vrot.slane %v4209_v11, %v5085_v54  ;;  %v4199_v41 = vld [vmem:[#allocation5 + $0x1e0] ss:$16 sps:$4 sm:$0xff]  }
  0x93   :  { %1986 = vmatpush1.bf16.msra.mxu0 %v4158_v35  ;;  %1901 = vmatprep.subr.bf16.mxu1 %v4159_v36  ;;  %v4197_v33 = vld [vmem:[#allocation5 + $0x5e4] ss:$16 sps:$4 sm:$0xff]   ;;  %v5120_v35 = vrot.slane %v4212_v12, %v5085_v54  ;;  %v5123_v36 = vrot.slane %v4218_v15, %v5085_v54  ;;  %v4228_v56 = vld [vmem:[#allocation5 + $0x600] ss:$16 sps:$4 sm:$0xff]  }
  0x94   :  { %1987 = vmatprep.subr.bf16.mxu0 %v4161_v37  ;;  %1915 = vmatprep.mubr.bf16.mxu1 %v5103_v17  ;;  %v295_v37 = vcombine.high %v272_v27, %v286_v31  ;;  %v4215_v47 = vld [vmem:[#allocation5 + $0x204] ss:$16 sps:$4 sm:$0xff]   ;;  %v4231_v63 = vld [vmem:[#allocation5 + $0x220] ss:$16 sps:$4 sm:$0xff]  }
  0x95   :  { %v4233_v59 = vld [vmem:[#allocation5 + $0x224] ss:$16 sps:$4 sm:$0xff]   ;;  %v4237_v3 = vld [vmem:[#allocation5 + $0x240] ss:$16 sps:$4 sm:$0xff]  }
  0x96   :  { %1902 = vmatpush1.bf16.msra.mxu1 %v4163_v38  ;;  %v5126_v38 = vrot.slane %v4221_v18, %v5085_v54  ;;  %v297_v54 = vcombine.high %v5129_v39, %v5132_v40  ;;  %v4243_v7 = vld [vmem:[#allocation5 + $0x260] ss:$16 sps:$4 sm:$0xff]   ;;  %v4257_v13 = vld [vmem:[#allocation5 + $0x2a4] ss:$16 sps:$4 sm:$0xff]  }
  0x97   :  { %1988 = vmatpush1.bf16.msra.mxu0 %v4164_v42  ;;  %1903 = vmatprep.subr.bf16.mxu1 %v4165_v43  ;;  %v4200_v42 = vld [vmem:[#allocation5 + $0x5e0] ss:$16 sps:$4 sm:$0xff]   ;;  %v186_v43 = vcombine.low %v5088_v62, %v5091_v1  ;;  %v4239_v1 = vld [vmem:[#allocation5 + $0x244] ss:$16 sps:$4 sm:$0xff]  }
  0x98   :  { %1989 = vmatprep.subr.bf16.mxu0 %v4167_v44  ;;  %v258_v44 = vcombine.low %v5094_v2, %v5097_v4  ;;  %v4242_v2 = vld [vmem:[#allocation5 + $0x644] ss:$16 sps:$4 sm:$0xff]   ;;  %v4240_v4 = vld [vmem:[#allocation5 + $0x640] ss:$16 sps:$4 sm:$0xff]  }
  0x99   :  { %v4246_v8 = vld [vmem:[#allocation5 + $0x660] ss:$16 sps:$4 sm:$0xff]   ;;  %v4260_v14 = vld [vmem:[#allocation5 + $0x6a4] ss:$16 sps:$4 sm:$0xff]  }
  0x9a   :  { %1904 = vmatpush1.bf16.msra.mxu1 %v4169_v45  ;;  %v222_v45 = vcombine.low %v200_v21, %v214_v22  ;;  %v4249_v11 = vld [vmem:[#allocation5 + $0x280] ss:$16 sps:$4 sm:$0xff]   ;;  %v4263_v18 = vld [vmem:[#allocation5 + $0x2c4] ss:$16 sps:$4 sm:$0xff]  }
  0x9b   :  { %1990 = vmatpush1.bf16.msra.mxu0 %v4170_v46  ;;  %1905 = vmatprep.subr.bf16.mxu1 %v4171_v49  ;;  %v294_v46 = vcombine.low %v272_v27, %v286_v31  ;;  %v5138_v49 = vpack.c.bf16 %v295_v37, %v223_v30  ;;  %v4252_v12 = vld [vmem:[#allocation5 + $0x680] ss:$16 sps:$4 sm:$0xff]   ;;  %v4266_v19 = vld [vmem:[#allocation5 + $0x6c4] ss:$16 sps:$4 sm:$0xff]  }
  0x9c   :  { %1991 = vmatprep.subr.bf16.mxu0 %v4173_v50  ;;  %v4230_v50 = vld [vmem:[#allocation5 + $0x604] ss:$16 sps:$4 sm:$0xff]   ;;  %v4255_v15 = vld [vmem:[#allocation5 + $0x2a0] ss:$16 sps:$4 sm:$0xff]  }
  0x9d   :  { %2001 = vmatprep.mubr.bf16.mxu0 %v5138_v49  ;;  %v5151_v58 = vpack.c.bf16 %v294_v46, %v222_v45  ;;  %v4258_v16 = vld [vmem:[#allocation5 + $0x6a0] ss:$16 sps:$4 sm:$0xff]   ;;  %v4269_v22 = vld [vmem:[#allocation5 + $0x2e4] ss:$16 sps:$4 sm:$0xff]  }
  0x9e   :  { %1906 = vmatpush1.bf16.msra.mxu1 %v4175_v51  ;;  %v189_v51 = vcombine.high %v5110_v28, %v5114_v32  ;;  %v4261_v20 = vld [vmem:[#allocation5 + $0x2c0] ss:$16 sps:$4 sm:$0xff]   ;;  %v4272_v23 = vld [vmem:[#allocation5 + $0x6e4] ss:$16 sps:$4 sm:$0xff]  }
  0x9f   :  { %1992 = vmatpush1.bf16.msra.mxu0 %v4176_v52  ;;  %1907 = vmatprep.subr.bf16.mxu1 %v4177_v53  ;;  %v261_v52 = vcombine.high %v5117_v34, %v5120_v35  ;;  %v225_v53 = vcombine.high %v5123_v36, %v5126_v38  ;;  %v4264_v21 = vld [vmem:[#allocation5 + $0x6c0] ss:$16 sps:$4 sm:$0xff]   ;;  %v4278_v27 = vld [vmem:[#allocation5 + $0x704] ss:$16 sps:$4 sm:$0xff]  }
  0xa0   :  { %1993 = vmatprep.subr.bf16.mxu0 %v4179_v55  ;;  %v4213_v55 = vld [vmem:[#allocation5 + $0x200] ss:$16 sps:$4 sm:$0xff]   ;;  %v4281_v31 = vld [vmem:[#allocation5 + $0x324] ss:$16 sps:$4 sm:$0xff]  }
  0xa1   :  { %v5155_v62 = vpack.c.bf16 %v297_v54, %v225_v53  ;;  %v4267_v24 = vld [vmem:[#allocation5 + $0x2e0] ss:$16 sps:$4 sm:$0xff]   ;;  %v4293_v46 = vld [vmem:[#allocation5 + $0x364] ss:$16 sps:$4 sm:$0xff]  }
  0xa2   :  { %1908 = vmatpush1.bf16.msra.mxu1 %v4181_v57  ;;  %v5149_v57 = vpack.c.bf16 %v258_v44, %v186_v43  ;;  %v4276_v30 = vld [vmem:[#allocation5 + $0x700] ss:$16 sps:$4 sm:$0xff]   ;;  %v4290_v43 = vld [vmem:[#allocation5 + $0x744] ss:$16 sps:$4 sm:$0xff]  }
  0xa3   :  { %1994 = vmatpush1.bf16.msra.mxu0 %v4182_v60  ;;  %1909 = vmatprep.subr.bf16.mxu1 %v4183_v61  ;;  %v4236_v60 = vld [vmem:[#allocation5 + $0x624] ss:$16 sps:$4 sm:$0xff]   ;;  %v5153_v61 = vpack.c.bf16 %v261_v52, %v189_v51  ;;  %v4279_v37 = vld [vmem:[#allocation5 + $0x320] ss:$16 sps:$4 sm:$0xff]  }
  0xa4   :  { %1995 = vmatprep.subr.bf16.mxu0 %v4185_v0  ;;  %v4234_v0 = vld [vmem:[#allocation5 + $0x620] ss:$16 sps:$4 sm:$0xff]   ;;  %v4299_v52 = vld [vmem:[#allocation5 + $0x384] ss:$16 sps:$4 sm:$0xff]  }
  0xa5   :  { %v4285_v44 = vld [vmem:[#allocation5 + $0x340] ss:$16 sps:$4 sm:$0xff]   ;;  %v4302_v53 = vld [vmem:[#allocation5 + $0x784] ss:$16 sps:$4 sm:$0xff]  }
  0xa6   :  { %1910 = vmatpush1.bf16.msra.mxu1 %v4187_v5  ;;  %v4245_v5 = vld [vmem:[#allocation5 + $0x264] ss:$16 sps:$4 sm:$0xff]   ;;  %v4288_v45 = vld [vmem:[#allocation5 + $0x740] ss:$16 sps:$4 sm:$0xff]  }
  0xa7   :  { %1996 = vmatpush1.bf16.msra.mxu0 %v4188_v6  ;;  %1911 = vmatprep.subr.bf16.mxu1 %v4189_v9  ;;  %v4248_v6 = vld [vmem:[#allocation5 + $0x664] ss:$16 sps:$4 sm:$0xff]   ;;  %v4294_v51 = vld [vmem:[#allocation5 + $0x760] ss:$16 sps:$4 sm:$0xff]  }
  0xa8   :  { %1997 = vmatprep.subr.bf16.mxu0 %v4191_v10  ;;  %v4251_v9 = vld [vmem:[#allocation5 + $0x284] ss:$16 sps:$4 sm:$0xff]   ;;  %v4297_v54 = vld [vmem:[#allocation5 + $0x380] ss:$16 sps:$4 sm:$0xff]  }
  0xa9   :  { %v4254_v10 = vld [vmem:[#allocation5 + $0x684] ss:$16 sps:$4 sm:$0xff]  }
  0xaa   :  { %1912 = vmatpush1.bf16.msra.mxu1 %v4193_v25  ;;  %v4270_v25 = vld [vmem:[#allocation5 + $0x6e0] ss:$16 sps:$4 sm:$0xff]  }
  0xab   :  { %1998 = vmatpush1.bf16.msra.mxu0 %v4194_v26  ;;  %1913 = vmatprep.subr.bf16.mxu1 %v4195_v29  ;;  %v4275_v26 = vld [vmem:[#allocation5 + $0x304] ss:$16 sps:$4 sm:$0xff]   ;;  %v4273_v29 = vld [vmem:[#allocation5 + $0x300] ss:$16 sps:$4 sm:$0xff]  }
  0xac   :  { %1999 = vmatprep.subr.bf16.mxu0 %v4197_v33  ;;  %v4284_v33 = vld [vmem:[#allocation5 + $0x724] ss:$16 sps:$4 sm:$0xff]  }
  0xae   :  { %1914 = vmatpush1.bf16.msra.mxu1 %v4199_v41  ;;  %v4282_v41 = vld [vmem:[#allocation5 + $0x720] ss:$16 sps:$4 sm:$0xff]  }
  0xaf   :  { %2000 = vmatpush1.bf16.msra.mxu0 %v4200_v42  ;;  %1926 = vmatprep.subr.bf16.mxu1 %v4215_v47  ;;  %v4287_v42 = vld [vmem:[#allocation5 + $0x344] ss:$16 sps:$4 sm:$0xff]  }
  0xb0   :  { %2012 = vmatprep.subr.bf16.mxu0 %v4230_v50  ;;  %v4296_v47 = vld [vmem:[#allocation5 + $0x764] ss:$16 sps:$4 sm:$0xff]   ;;  %v4291_v50 = vld [vmem:[#allocation5 + $0x360] ss:$16 sps:$4 sm:$0xff]  }
  0xb1   :  { %1916 = vmatmul.mubr.bf16.vlgmr.msra.gmra.mrb[0].mxu1 %v5149_v57 }
  0xb2   :  { %2002 = vmatmul.mubr.bf16.vlgmr.msra.gmra.mrb[0].mxu0 %v5151_v58  ;;  %1927 = vmatpush1.bf16.msra.mxu1 %v4213_v55  ;;  %v4300_v55 = vld [vmem:[#allocation5 + $0x780] ss:$16 sps:$4 sm:$0xff]  }
  0xb3   :  { %2013 = vmatpush1.bf16.msra.mxu0 %v4228_v56  ;;  %1928 = vmatprep.subr.bf16.mxu1 %v4233_v59  ;;  %v4305_v56 = vld [vmem:[#allocation5 + $0x3a4] ss:$16 sps:$4 sm:$0xff]  }
  0xb4   :  { %2014 = vmatprep.subr.bf16.mxu0 %v4236_v60  ;;  %1958 = vmatprep.mubr.bf16.mxu1 %v5153_v61  ;;  %v4308_v59 = vld [vmem:[#allocation5 + $0x7a4] ss:$16 sps:$4 sm:$0xff]   ;;  %v4303_v60 = vld [vmem:[#allocation5 + $0x3a0] ss:$16 sps:$4 sm:$0xff]  }
  0xb5   :  { %2044 = vmatprep.mubr.bf16.mxu0 %v5155_v62 }
  0xb6   :  { %1929 = vmatpush1.bf16.msra.mxu1 %v4231_v63  ;;  %v4306_v63 = vld [vmem:[#allocation5 + $0x7a0] ss:$16 sps:$4 sm:$0xff]  }
  0xb7   :  { %2015 = vmatpush1.bf16.msra.mxu0 %v4234_v0  ;;  %1930 = vmatprep.subr.bf16.mxu1 %v4239_v1  ;;  %v4311_v0 = vld [vmem:[#allocation5 + $0x3c4] ss:$16 sps:$4 sm:$0xff]  }
  0xb8   :  { %2016 = vmatprep.subr.bf16.mxu0 %v4242_v2  ;;  %v4314_v1 = vld [vmem:[#allocation5 + $0x7c4] ss:$16 sps:$4 sm:$0xff]   ;;  %v4309_v2 = vld [vmem:[#allocation5 + $0x3c0] ss:$16 sps:$4 sm:$0xff]  }
  0xba   :  { %1931 = vmatpush1.bf16.msra.mxu1 %v4237_v3  ;;  %v4312_v3 = vld [vmem:[#allocation5 + $0x7c0] ss:$16 sps:$4 sm:$0xff]  }
  0xbb   :  { %2017 = vmatpush1.bf16.msra.mxu0 %v4240_v4  ;;  %1932 = vmatprep.subr.bf16.mxu1 %v4245_v5  ;;  %v4317_v4 = vld [vmem:[#allocation5 + $0x3e4] ss:$16 sps:$4 sm:$0xff]  }
  0xbc   :  { %2018 = vmatprep.subr.bf16.mxu0 %v4248_v6  ;;  %v4320_v5 = vld [vmem:[#allocation5 + $0x7e4] ss:$16 sps:$4 sm:$0xff]   ;;  %v188_v6 = vcombine.low %v5110_v28, %v5114_v32  ;;  %v4321_v32 = vld [vmem:[#allocation5 + $0x8] ss:$16 sps:$4 sm:$0xff]  }
  0xbe   :  { %1933 = vmatpush1.bf16.msra.mxu1 %v4243_v7  ;;  %v260_v7 = vcombine.low %v5117_v34, %v5120_v35  ;;  %v4324_v34 = vld [vmem:[#allocation7] ss:$16 sps:$4 sm:$0xff]   ;;  %v4329_v35 = vld [vmem:[#allocation5 + $0x2c] ss:$16 sps:$4 sm:$0xff]  }
  0xbf   :  { %2019 = vmatpush1.bf16.msra.mxu0 %v4246_v8  ;;  %1934 = vmatprep.subr.bf16.mxu1 %v4251_v9  ;;  %v224_v8 = vcombine.low %v5123_v36, %v5126_v38  ;;  %v296_v9 = vcombine.low %v5129_v39, %v5132_v40  ;;  %v4332_v36 = vld [vmem:[#allocation7 + $0x24] ss:$16 sps:$4 sm:$0xff]   ;;  %v4327_v38 = vld [vmem:[#allocation5 + $0x28] ss:$16 sps:$4 sm:$0xff]   ;;  %v4330_v39 = vld [vmem:[#allocation7 + $0x20] ss:$16 sps:$4 sm:$0xff]  }
  0xc0   :  { %2020 = vmatprep.subr.bf16.mxu0 %v4254_v10  ;;  %v4315_v10 = vld [vmem:[#allocation5 + $0x3e0] ss:$16 sps:$4 sm:$0xff]  }
  0xc1   :  { %v5171_v28 = vpack.c.bf16 %v296_v9, %v224_v8  ;;  %v322_v40 = vld [vmem:[%s5272_s1] sm:$0xff]  ;;  %v4491_v9 = vld [vmem:[#allocation10 + $0x54] ss:$8 sps:$4 sm:$0xff]  }
  0xc2   :  { %1935 = vmatpush1.bf16.msra.mxu1 %v4249_v11  ;;  %v4318_v11 = vld [vmem:[#allocation5 + $0x7e0] ss:$16 sps:$4 sm:$0xff]  }
  0xc3   :  { %2021 = vmatpush1.bf16.msra.mxu0 %v4252_v12  ;;  %1936 = vmatprep.subr.bf16.mxu1 %v4257_v13  ;;  %v4323_v12 = vld [vmem:[#allocation5 + $0xc] ss:$16 sps:$4 sm:$0xff]   ;;  %v4326_v13 = vld [vmem:[#allocation7 + $0x4] ss:$16 sps:$4 sm:$0xff]   ;;  %v4483_v8 = vld [vmem:[#allocation10 + $0x40] ss:$8 sps:$4 sm:$0xff]  }
  0xc4   :  { %2022 = vmatprep.subr.bf16.mxu0 %v4260_v14  ;;  %v5169_v14 = vpack.c.bf16 %v260_v7, %v188_v6  ;;  %v4369_v6 = vld [vmem:[#allocation5 + $0x1c8] ss:$16 sps:$4 sm:$0xff]   ;;  %v4374_v7 = vld [vmem:[#allocation5 + $0x1ec] ss:$16 sps:$4 sm:$0xff]  }
  0xc6   :  { %1937 = vmatpush1.bf16.msra.mxu1 %v4255_v15  ;;  %v323_v15 = vld [vmem:[%s5272_s1 + $0x8] sm:$0xff] }
  0xc7   :  { %2023 = vmatpush1.bf16.msra.mxu0 %v4258_v16  ;;  %1938 = vmatprep.subr.bf16.mxu1 %v4263_v18  ;;  %v4335_v16 = vld [vmem:[#allocation5 + $0x4c] ss:$16 sps:$4 sm:$0xff]  }
  0xc8   :  { %2024 = vmatprep.subr.bf16.mxu0 %v4266_v19  ;;  %v4377_v18 = vld [vmem:[#allocation7 + $0xc] ss:$16 sps:$4 sm:$0xff]   ;;  %v4910_v19 = vmov 0  }
  0xca   :  { %1939 = vmatpush1.bf16.msra.mxu1 %v4261_v20  ;;  %v324_v20 = vpack.c.bf16 %v323_v15, %v322_v40  ;;  %v4501_v40 = vld [vmem:[#allocation10 + $0x70] ss:$8 sps:$4 sm:$0xff]   ;;  %v4509_v15 = vld [vmem:[#allocation10 + $0x84] ss:$8 sps:$4 sm:$0xff]  }
  0xcb   :  { %2025 = vmatpush1.bf16.msra.mxu0 %v4264_v21  ;;  %1940 = vmatprep.subr.bf16.mxu1 %v4269_v22  ;;  %v4333_v21 = vld [vmem:[#allocation5 + $0x48] ss:$16 sps:$4 sm:$0xff]  }
  0xcc   :  { %2026 = vmatprep.subr.bf16.mxu0 %v4272_v23  ;;  %v4375_v22 = vld [vmem:[#allocation7 + $0x8] ss:$16 sps:$4 sm:$0xff]   ;;  %v4338_v23 = vld [vmem:[#allocation5 + $0x6c] ss:$16 sps:$4 sm:$0xff]  }
  0xce   :  { %1941 = vmatpush1.bf16.msra.mxu1 %v4267_v24  ;;  %v4383_v24 = vld [vmem:[#allocation7 + $0x2c] ss:$16 sps:$4 sm:$0xff]  }
  0xcf   :  { %2027 = vmatpush1.bf16.msra.mxu0 %v4270_v25  ;;  %1942 = vmatprep.subr.bf16.mxu1 %v4275_v26  ;;  %v4336_v25 = vld [vmem:[#allocation5 + $0x68] ss:$16 sps:$4 sm:$0xff]  }
  0xd0   :  { %2028 = vmatprep.subr.bf16.mxu0 %v4278_v27  ;;  %v4381_v26 = vld [vmem:[#allocation7 + $0x28] ss:$16 sps:$4 sm:$0xff]   ;;  %v4341_v27 = vld [vmem:[#allocation5 + $0x8c] ss:$16 sps:$4 sm:$0xff]  }
  0xd2   :  { %1943 = vmatpush1.bf16.msra.mxu1 %v4273_v29  ;;  %v4344_v29 = vld [vmem:[#allocation5 + $0xac] ss:$16 sps:$4 sm:$0xff]  }
  0xd3   :  { %2029 = vmatpush1.bf16.msra.mxu0 %v4276_v30  ;;  %1944 = vmatprep.subr.bf16.mxu1 %v4281_v31  ;;  %v4342_v30 = vld [vmem:[#allocation5 + $0xa8] ss:$16 sps:$4 sm:$0xff]   ;;  %v4347_v31 = vld [vmem:[#allocation5 + $0xcc] ss:$16 sps:$4 sm:$0xff]  }
  0xd4   :  { %2030 = vmatprep.subr.bf16.mxu0 %v4284_v33  ;;  %v4345_v33 = vld [vmem:[#allocation5 + $0xc8] ss:$16 sps:$4 sm:$0xff]  }
  0xd6   :  { %1945 = vmatpush1.bf16.msra.mxu1 %v4279_v37  ;;  %v4350_v37 = vld [vmem:[#allocation5 + $0xec] ss:$16 sps:$4 sm:$0xff]  }
  0xd7   :  { %2031 = vmatpush1.bf16.msra.mxu0 %v4282_v41  ;;  %1946 = vmatprep.subr.bf16.mxu1 %v4287_v42  ;;  %v4348_v41 = vld [vmem:[#allocation5 + $0xe8] ss:$16 sps:$4 sm:$0xff]   ;;  %v4353_v42 = vld [vmem:[#allocation5 + $0x10c] ss:$16 sps:$4 sm:$0xff]  }
  0xd8   :  { %2032 = vmatprep.subr.bf16.mxu0 %v4290_v43  ;;  %v4351_v43 = vld [vmem:[#allocation5 + $0x108] ss:$16 sps:$4 sm:$0xff]  }
  0xda   :  { %1947 = vmatpush1.bf16.msra.mxu1 %v4285_v44  ;;  %v4356_v44 = vld [vmem:[#allocation5 + $0x12c] ss:$16 sps:$4 sm:$0xff]  }
  0xdb   :  { %2033 = vmatpush1.bf16.msra.mxu0 %v4288_v45  ;;  %1948 = vmatprep.subr.bf16.mxu1 %v4293_v46  ;;  %v4354_v45 = vld [vmem:[#allocation5 + $0x128] ss:$16 sps:$4 sm:$0xff]   ;;  %v4359_v46 = vld [vmem:[#allocation5 + $0x14c] ss:$16 sps:$4 sm:$0xff]  }
  0xdc   :  { %2034 = vmatprep.subr.bf16.mxu0 %v4296_v47  ;;  %v4461_v47 = vld [vmem:[#allocation10 + $0x4] ss:$8 sps:$4 sm:$0xff]  }
  0xde   :  { %1949 = vmatpush1.bf16.msra.mxu1 %v4291_v50  ;;  %v4357_v50 = vld [vmem:[#allocation5 + $0x148] ss:$16 sps:$4 sm:$0xff]  }
  0xdf   :  { %2035 = vmatpush1.bf16.msra.mxu0 %v4294_v51  ;;  %1950 = vmatprep.subr.bf16.mxu1 %v4299_v52  ;;  %v4362_v51 = vld [vmem:[#allocation5 + $0x16c] ss:$16 sps:$4 sm:$0xff]   ;;  %v4459_v52 = vld [vmem:[#allocation10] ss:$8 sps:$4 sm:$0xff]  }
  0xe0   :  { %2036 = vmatprep.subr.bf16.mxu0 %v4302_v53  ;;  %v4467_v53 = vld [vmem:[#allocation10 + $0x14] ss:$8 sps:$4 sm:$0xff]  }
  0xe2   :  { %1951 = vmatpush1.bf16.msra.mxu1 %v4297_v54  ;;  %v4360_v54 = vld [vmem:[#allocation5 + $0x168] ss:$16 sps:$4 sm:$0xff]  }
  0xe3   :  { %2037 = vmatpush1.bf16.msra.mxu0 %v4300_v55  ;;  %1952 = vmatprep.subr.bf16.mxu1 %v4305_v56  ;;  %v4365_v55 = vld [vmem:[#allocation5 + $0x18c] ss:$16 sps:$4 sm:$0xff]   ;;  %v4465_v56 = vld [vmem:[#allocation10 + $0x10] ss:$8 sps:$4 sm:$0xff]  }
  0xe4   :  { %2038 = vmatprep.subr.bf16.mxu0 %v4308_v59  ;;  %v4473_v59 = vld [vmem:[#allocation10 + $0x24] ss:$8 sps:$4 sm:$0xff]  }
  0xe6   :  { %1953 = vmatpush1.bf16.msra.mxu1 %v4303_v60  ;;  %v4363_v60 = vld [vmem:[#allocation5 + $0x188] ss:$16 sps:$4 sm:$0xff]  }
  0xe7   :  { %2039 = vmatpush1.bf16.msra.mxu0 %v4306_v63  ;;  %1954 = vmatprep.subr.bf16.mxu1 %v4311_v0  ;;  %v4368_v63 = vld [vmem:[#allocation5 + $0x1ac] ss:$16 sps:$4 sm:$0xff]   ;;  %v4471_v0 = vld [vmem:[#allocation10 + $0x20] ss:$8 sps:$4 sm:$0xff]  }
  0xe8   :  { %2040 = vmatprep.subr.bf16.mxu0 %v4314_v1  ;;  %v4479_v1 = vld [vmem:[#allocation10 + $0x34] ss:$8 sps:$4 sm:$0xff]  }
  0xea   :  { %1955 = vmatpush1.bf16.msra.mxu1 %v4309_v2  ;;  %v4366_v2 = vld [vmem:[#allocation5 + $0x1a8] ss:$16 sps:$4 sm:$0xff]  }
  0xeb   :  { %2041 = vmatpush1.bf16.msra.mxu0 %v4312_v3  ;;  %1956 = vmatprep.subr.bf16.mxu1 %v4317_v4  ;;  %v4371_v3 = vld [vmem:[#allocation5 + $0x1cc] ss:$16 sps:$4 sm:$0xff]   ;;  %v4477_v4 = vld [vmem:[#allocation10 + $0x30] ss:$8 sps:$4 sm:$0xff]  }
  0xec   :  { %2042 = vmatprep.subr.bf16.mxu0 %v4320_v5  ;;  %v4485_v5 = vld [vmem:[#allocation10 + $0x44] ss:$8 sps:$4 sm:$0xff]  }
  0xee   :  { %1957 = vmatpush1.bf16.msra.mxu1 %v4315_v10  ;;  %v4372_v10 = vld [vmem:[#allocation5 + $0x1e8] ss:$16 sps:$4 sm:$0xff]  }
  0xef   :  { %2043 = vmatpush1.bf16.msra.mxu0 %v4318_v11  ;;  %2055 = vmatprep.subr.bf16.mxu1 %v4323_v12  ;;  %v4380_v11 = vld [vmem:[#allocation5 + $0x20c] ss:$16 sps:$4 sm:$0xff]   ;;  %v4489_v12 = vld [vmem:[#allocation10 + $0x50] ss:$8 sps:$4 sm:$0xff]  }
  0xf0   :  { %2329 = vmatprep.subr.bf16.mxu0 %v4326_v13  ;;  %v4497_v13 = vld [vmem:[#allocation10 + $0x64] ss:$8 sps:$4 sm:$0xff]  }
  0xf1   :  { %1959 = vmatmul.mubr.bf16.vlgmr.msra.gmra.mrb[0].mxu1 %v5169_v14 }
  0xf2   :  { %2045 = vmatmul.mubr.bf16.vlgmr.msra.gmra.mrb[0].mxu0 %v5171_v28  ;;  %2056 = vmatpush1.bf16.msra.mxu1 %v4321_v32  ;;  %v4378_v32 = vld [vmem:[#allocation5 + $0x208] ss:$16 sps:$4 sm:$0xff]  }
  0xf3   :  { %2330 = vmatpush1.bf16.msra.mxu0 %v4324_v34  ;;  %2057 = vmatprep.subr.bf16.mxu1 %v4329_v35  ;;  %v4386_v34 = vld [vmem:[#allocation5 + $0x22c] ss:$16 sps:$4 sm:$0xff]   ;;  %v4495_v35 = vld [vmem:[#allocation10 + $0x60] ss:$8 sps:$4 sm:$0xff]  }
  0xf4   :  { %2331 = vmatprep.subr.bf16.mxu0 %v4332_v36  ;;  %2361 = vmatprep.mubr.bf16.mxu0 %v4910_v19  ;;  %v4503_v36 = vld [vmem:[#allocation10 + $0x74] ss:$8 sps:$4 sm:$0xff]  }
  0xf5   :  { %2087 = vmatprep.mubr.bf16.mxu1 %v5103_v17  ;;  %v4339_v17 = vld [vmem:[#allocation5 + $0x88] ss:$16 sps:$4 sm:$0xff]  }
  0xf6   :  { %2058 = vmatpush1.bf16.msra.mxu1 %v4327_v38  ;;  %v4384_v38 = vld [vmem:[#allocation5 + $0x228] ss:$16 sps:$4 sm:$0xff]  }
  0xf7   :  { %2332 = vmatpush1.bf16.msra.mxu0 %v4330_v39  ;;  %2059 = vmatprep.subr.bf16.mxu1 %v4335_v16  ;;  %v4389_v39 = vld [vmem:[#allocation5 + $0x24c] ss:$16 sps:$4 sm:$0xff]   ;;  %v4387_v16 = vld [vmem:[#allocation5 + $0x248] ss:$16 sps:$4 sm:$0xff]  }
  0xf8   :  { %2372 = vmatprep.subr.bf16.mxu0 %v4377_v18  ;;  %v4392_v18 = vld [vmem:[#allocation5 + $0x26c] ss:$16 sps:$4 sm:$0xff]  }
  0xfa   :  { %3875 = vmatmul.mubr.msk.bf16.vlgmr.msra.gmra.mrb[4].mxu0 %vm2325_vm0, %v324_v20  ;;  %2060 = vmatpush1.bf16.msra.mxu1 %v4333_v21  ;;  %v4395_v21 = vld [vmem:[#allocation5 + $0x28c] ss:$16 sps:$4 sm:$0xff]  }
  0xfb   :  { %2373 = vmatpush1.bf16.msra.mxu0 %v4375_v22  ;;  %2061 = vmatprep.subr.bf16.mxu1 %v4338_v23  ;;  %v4513_v22 = vld [vmem:[#allocation10 + $0x90] ss:$8 sps:$4 sm:$0xff]  }
  0xfc   :  { %2374 = vmatprep.subr.bf16.mxu0 %v4383_v24  ;;  %2404 = vmatprep.mubr.bf16.mxu0 %v4910_v19  ;;  %v4507_v19 = vld [vmem:[#allocation10 + $0x80] ss:$8 sps:$4 sm:$0xff]   ;;  %v4398_v24 = vld [vmem:[#allocation5 + $0x2ac] ss:$16 sps:$4 sm:$0xff]  }
  0xfd   :  { %v4393_v23 = vld [vmem:[#allocation5 + $0x288] ss:$16 sps:$4 sm:$0xff]  }
  0xfe   :  { %2062 = vmatpush1.bf16.msra.mxu1 %v4336_v25  ;;  %v4519_v25 = vld [vmem:[#allocation10 + $0xa0] ss:$8 sps:$4 sm:$0xff]  }
  0xff   :  { %2375 = vmatpush1.bf16.msra.mxu0 %v4381_v26  ;;  %2063 = vmatprep.subr.bf16.mxu1 %v4341_v27  ;;  %v4527_v26 = vld [vmem:[#allocation10 + $0xb4] ss:$8 sps:$4 sm:$0xff]   ;;  %v4396_v27 = vld [vmem:[#allocation5 + $0x2a8] ss:$16 sps:$4 sm:$0xff]  }
 0x100   :  { %2891 = vmatprep.subr.bf16.mxu0 %v4461_v47  ;;  %v4543_v47 = vld [vmem:[#allocation10 + $0xe0] ss:$8 sps:$4 sm:$0xff]  }
 0x102   :  { %3876 = vmatmul.mubr.msk.bf16.vlgmr.msra.gmra.mrb[8].mxu0 %vm2325_vm0, %v324_v20  ;;  %2064 = vmatpush1.bf16.msra.mxu1 %v4339_v17  ;;  %v4515_v20 = vld [vmem:[#allocation10 + $0x94] ss:$8 sps:$4 sm:$0xff]   ;;  %v4525_v17 = vld [vmem:[#allocation10 + $0xb0] ss:$8 sps:$4 sm:$0xff]  }
 0x103   :  { %2065 = vmatprep.subr.bf16.mxu1 %v4344_v29  ;;  %2892 = vmatpush1.bf16.msra.mxu0 %v4459_v52  ;;  %v4401_v29 = vld [vmem:[#allocation5 + $0x2cc] ss:$16 sps:$4 sm:$0xff]  }
 0x104   :  { %2893 = vmatprep.subr.bf16.mxu0 %v4467_v53  ;;  %v4551_v52 = vld [vmem:[#allocation10 + $0xf4] ss:$8 sps:$4 sm:$0xff]   ;;  %v4549_v53 = vld [vmem:[#allocation10 + $0xf0] ss:$8 sps:$4 sm:$0xff]  }
 0x106   :  { %2066 = vmatpush1.bf16.msra.mxu1 %v4342_v30  ;;  %v4399_v30 = vld [vmem:[#allocation5 + $0x2c8] ss:$16 sps:$4 sm:$0xff]  }
 0x107   :  { %2067 = vmatprep.subr.bf16.mxu1 %v4347_v31  ;;  %2894 = vmatpush1.bf16.msra.mxu0 %v4465_v56  ;;  %v4533_v31 = vld [vmem:[#allocation10 + $0xc4] ss:$8 sps:$4 sm:$0xff]  }
 0x108   :  { %2895 = vmatprep.subr.bf16.mxu0 %v4473_v59  ;;  %v4557_v56 = vld [vmem:[#allocation10 + $0x104] ss:$8 sps:$4 sm:$0xff]  }
 0x109   :  { %v4416_v59 = vld [vmem:[#allocation5 + $0x36c] ss:$16 sps:$4 sm:$0xff]  }
 0x10a   :  { %2068 = vmatpush1.bf16.msra.mxu1 %v4345_v33  ;;  %v4531_v33 = vld [vmem:[#allocation10 + $0xc0] ss:$8 sps:$4 sm:$0xff]  }
 0x10b   :  { %2069 = vmatprep.subr.bf16.mxu1 %v4350_v37  ;;  %2896 = vmatpush1.bf16.msra.mxu0 %v4471_v0  ;;  %v4404_v37 = vld [vmem:[#allocation5 + $0x2ec] ss:$16 sps:$4 sm:$0xff]   ;;  %v4417_v0 = vld [vmem:[#allocation5 + $0x388] ss:$16 sps:$4 sm:$0xff]  }
 0x10c   :  { %2897 = vmatprep.subr.bf16.mxu0 %v4479_v1  ;;  %v4422_v1 = vld [vmem:[#allocation5 + $0x3ac] ss:$16 sps:$4 sm:$0xff]  }
 0x10e   :  { %2070 = vmatpush1.bf16.msra.mxu1 %v4348_v41  ;;  %v4402_v41 = vld [vmem:[#allocation5 + $0x2e8] ss:$16 sps:$4 sm:$0xff]  }
 0x10f   :  { %2071 = vmatprep.subr.bf16.mxu1 %v4353_v42  ;;  %2898 = vmatpush1.bf16.msra.mxu0 %v4477_v4  ;;  %v4539_v42 = vld [vmem:[#allocation10 + $0xd4] ss:$8 sps:$4 sm:$0xff]   ;;  %v4423_v4 = vld [vmem:[#allocation5 + $0x3c8] ss:$16 sps:$4 sm:$0xff]  }
 0x110   :  { %2899 = vmatprep.subr.bf16.mxu0 %v4485_v5  ;;  %v4428_v5 = vld [vmem:[#allocation5 + $0x3ec] ss:$16 sps:$4 sm:$0xff]  }
 0x112   :  { %2072 = vmatpush1.bf16.msra.mxu1 %v4351_v43  ;;  %v4537_v43 = vld [vmem:[#allocation10 + $0xd0] ss:$8 sps:$4 sm:$0xff]  }
 0x113   :  { %2073 = vmatprep.subr.bf16.mxu1 %v4356_v44  ;;  %2900 = vmatpush1.bf16.msra.mxu0 %v4483_v8  ;;  %v4407_v44 = vld [vmem:[#allocation5 + $0x30c] ss:$16 sps:$4 sm:$0xff]   ;;  %v4429_v8 = vld [vmem:[#allocation5 + $0x408] ss:$16 sps:$4 sm:$0xff]  }
 0x114   :  { %2901 = vmatprep.subr.bf16.mxu0 %v4491_v9  ;;  %v4434_v9 = vld [vmem:[#allocation5 + $0x42c] ss:$16 sps:$4 sm:$0xff]  }
 0x116   :  { %2074 = vmatpush1.bf16.msra.mxu1 %v4354_v45  ;;  %v4405_v45 = vld [vmem:[#allocation5 + $0x308] ss:$16 sps:$4 sm:$0xff]  }
 0x117   :  { %2075 = vmatprep.subr.bf16.mxu1 %v4359_v46  ;;  %2902 = vmatpush1.bf16.msra.mxu0 %v4489_v12  ;;  %v4545_v46 = vld [vmem:[#allocation10 + $0xe4] ss:$8 sps:$4 sm:$0xff]   ;;  %v4435_v12 = vld [vmem:[#allocation5 + $0x448] ss:$16 sps:$4 sm:$0xff]  }
 0x118   :  { %2903 = vmatprep.subr.bf16.mxu0 %v4497_v13  ;;  %v4440_v13 = vld [vmem:[#allocation5 + $0x46c] ss:$16 sps:$4 sm:$0xff]  }
 0x11a   :  { %2076 = vmatpush1.bf16.msra.mxu1 %v4357_v50  ;;  %v4410_v50 = vld [vmem:[#allocation5 + $0x32c] ss:$16 sps:$4 sm:$0xff]  }
 0x11b   :  { %2077 = vmatprep.subr.bf16.mxu1 %v4362_v51  ;;  %2904 = vmatpush1.bf16.msra.mxu0 %v4495_v35  ;;  %v4408_v51 = vld [vmem:[#allocation5 + $0x328] ss:$16 sps:$4 sm:$0xff]  }
 0x11c   :  { %2905 = vmatprep.subr.bf16.mxu0 %v4503_v36  ;;  %v4441_v35 = vld [vmem:[#allocation5 + $0x488] ss:$16 sps:$4 sm:$0xff]   ;;  %v4446_v36 = vld [vmem:[#allocation5 + $0x4ac] ss:$16 sps:$4 sm:$0xff]  }
 0x11e   :  { %2078 = vmatpush1.bf16.msra.mxu1 %v4360_v54  ;;  %v4413_v54 = vld [vmem:[#allocation5 + $0x34c] ss:$16 sps:$4 sm:$0xff]  }
 0x11f   :  { %2079 = vmatprep.subr.bf16.mxu1 %v4365_v55  ;;  %2906 = vmatpush1.bf16.msra.mxu0 %v4501_v40  ;;  %v4411_v55 = vld [vmem:[#allocation5 + $0x348] ss:$16 sps:$4 sm:$0xff]  }
 0x120   :  { %2907 = vmatprep.subr.bf16.mxu0 %v4509_v15  ;;  %v4450_v40 = vld [vmem:[#allocation5 + $0x4e8] ss:$16 sps:$4 sm:$0xff]   ;;  %v4455_v15 = vld [vmem:[#allocation5 + $0x50c] ss:$16 sps:$4 sm:$0xff]  }
 0x122   :  { %2080 = vmatpush1.bf16.msra.mxu1 %v4363_v60  ;;  %v4414_v60 = vld [vmem:[#allocation5 + $0x368] ss:$16 sps:$4 sm:$0xff]  }
 0x123   :  { %2081 = vmatprep.subr.bf16.mxu1 %v4368_v63  ;;  %2908 = vmatpush1.bf16.msra.mxu0 %v4507_v19  ;;  %v4419_v63 = vld [vmem:[#allocation5 + $0x38c] ss:$16 sps:$4 sm:$0xff]   ;;  %v4456_v19 = vld [vmem:[#allocation5 + $0x528] ss:$16 sps:$4 sm:$0xff]  }
 0x124   :  { %2909 = vmatprep.subr.bf16.mxu0 %v4515_v20  ;;  %v4464_v20 = vld [vmem:[#allocation5 + $0x54c] ss:$16 sps:$4 sm:$0xff]  }
 0x126   :  { %2082 = vmatpush1.bf16.msra.mxu1 %v4366_v2  ;;  %v4420_v2 = vld [vmem:[#allocation5 + $0x3a8] ss:$16 sps:$4 sm:$0xff]  }
 0x127   :  { %2083 = vmatprep.subr.bf16.mxu1 %v4371_v3  ;;  %2910 = vmatpush1.bf16.msra.mxu0 %v4513_v22  ;;  %v4425_v3 = vld [vmem:[#allocation5 + $0x3cc] ss:$16 sps:$4 sm:$0xff]   ;;  %v4468_v22 = vld [vmem:[#allocation5 + $0x568] ss:$16 sps:$4 sm:$0xff]  }
 0x12a   :  { %2084 = vmatpush1.bf16.msra.mxu1 %v4369_v6  ;;  %v4426_v6 = vld [vmem:[#allocation5 + $0x3e8] ss:$16 sps:$4 sm:$0xff]  }
 0x12b   :  { %2085 = vmatprep.subr.bf16.mxu1 %v4374_v7  ;;  %v4431_v7 = vld [vmem:[#allocation5 + $0x40c] ss:$16 sps:$4 sm:$0xff]  }
 0x12e   :  { %2086 = vmatpush1.bf16.msra.mxu1 %v4372_v10  ;;  %v4432_v10 = vld [vmem:[#allocation5 + $0x428] ss:$16 sps:$4 sm:$0xff]  }
 0x12f   :  { %2098 = vmatprep.subr.bf16.mxu1 %v4380_v11  ;;  %v4437_v11 = vld [vmem:[#allocation5 + $0x44c] ss:$16 sps:$4 sm:$0xff]  }
 0x131   :  { %2088 = vmatmul.mubr.bf16.vlgmr.msra.gmra.mrb[4].mxu1 %v5149_v57  ;;  %v4390_v57 = vld [vmem:[#allocation5 + $0x268] ss:$16 sps:$4 sm:$0xff]  }
 0x132   :  { %2099 = vmatpush1.bf16.msra.mxu1 %v4378_v32  ;;  %2130 = vmatprep.mubr.bf16.mxu1 %v5153_v61  ;;  %v4521_v61 = vld [vmem:[#allocation10 + $0xa4] ss:$8 sps:$4 sm:$0xff]   ;;  %v4438_v32 = vld [vmem:[#allocation5 + $0x468] ss:$16 sps:$4 sm:$0xff]  }
 0x133   :  { %2100 = vmatprep.subr.bf16.mxu1 %v4386_v34  ;;  %2911 = vmatprep.subr.bf16.mxu0 %v4521_v61  ;;  %v4443_v34 = vld [vmem:[#allocation5 + $0x48c] ss:$16 sps:$4 sm:$0xff]  }
 0x134   :  { %2912 = vmatpush1.bf16.msra.mxu0 %v4519_v25  ;;  %v4476_v61 = vld [vmem:[#allocation5 + $0x58c] ss:$16 sps:$4 sm:$0xff]   ;;  %v4480_v25 = vld [vmem:[#allocation5 + $0x5a8] ss:$16 sps:$4 sm:$0xff]  }
 0x135   :  { %2913 = vmatprep.subr.bf16.mxu0 %v4527_v26  ;;  %v4488_v26 = vld [vmem:[#allocation5 + $0x5cc] ss:$16 sps:$4 sm:$0xff]  }
 0x136   :  { %2101 = vmatpush1.bf16.msra.mxu1 %v4384_v38  ;;  %v4449_v38 = vld [vmem:[#allocation5 + $0x4cc] ss:$16 sps:$4 sm:$0xff]  }
 0x137   :  { %2102 = vmatprep.subr.bf16.mxu1 %v4389_v39  ;;  %v4452_v39 = vld [vmem:[#allocation5 + $0x4ec] ss:$16 sps:$4 sm:$0xff]  }
 0x138   :  { %2914 = vmatpush1.bf16.msra.mxu0 %v4525_v17  ;;  %v4494_v17 = vld [vmem:[#allocation5 + $0x5ec] ss:$16 sps:$4 sm:$0xff]  }
 0x139   :  { %2915 = vmatprep.subr.bf16.mxu0 %v4533_v31  ;;  %v4498_v31 = vld [vmem:[#allocation5 + $0x608] ss:$16 sps:$4 sm:$0xff]  }
 0x13a   :  { %2103 = vmatpush1.bf16.msra.mxu1 %v4387_v16  ;;  %v4453_v16 = vld [vmem:[#allocation5 + $0x508] ss:$16 sps:$4 sm:$0xff]  }
 0x13b   :  { %2104 = vmatprep.subr.bf16.mxu1 %v4392_v18  ;;  %v4458_v18 = vld [vmem:[#allocation5 + $0x52c] ss:$16 sps:$4 sm:$0xff]  }
 0x13c   :  { %2916 = vmatpush1.bf16.msra.mxu0 %v4531_v33  ;;  %v4506_v33 = vld [vmem:[#allocation5 + $0x62c] ss:$16 sps:$4 sm:$0xff]  }
 0x13d   :  { %2917 = vmatprep.subr.bf16.mxu0 %v4539_v42  ;;  %v4510_v42 = vld [vmem:[#allocation5 + $0x648] ss:$16 sps:$4 sm:$0xff]  }
 0x13e   :  { %2105 = vmatpush1.bf16.msra.mxu1 %v4390_v57  ;;  %v4462_v57 = vld [vmem:[#allocation5 + $0x548] ss:$16 sps:$4 sm:$0xff]  }
 0x13f   :  { %2106 = vmatprep.subr.bf16.mxu1 %v4395_v21  ;;  %v4470_v21 = vld [vmem:[#allocation5 + $0x56c] ss:$16 sps:$4 sm:$0xff]  }
 0x140   :  { %2918 = vmatpush1.bf16.msra.mxu0 %v4537_v43  ;;  %v4518_v43 = vld [vmem:[#allocation5 + $0x66c] ss:$16 sps:$4 sm:$0xff]  }
 0x141   :  { %2919 = vmatprep.subr.bf16.mxu0 %v4545_v46  ;;  %v5191_v46 = vsub.s32 0, %v5082_v48 }
 0x142   :  { %2107 = vmatpush1.bf16.msra.mxu1 %v4393_v23  ;;  %v4474_v23 = vld [vmem:[#allocation5 + $0x588] ss:$16 sps:$4 sm:$0xff]  }
 0x143   :  { %2108 = vmatprep.subr.bf16.mxu1 %v4398_v24  ;;  %v4482_v24 = vld [vmem:[#allocation5 + $0x5ac] ss:$16 sps:$4 sm:$0xff]  }
 0x144   :  { %2920 = vmatpush1.bf16.msra.mxu0 %v4543_v47  ;;  %v4522_v47 = vld [vmem:[#allocation5 + $0x688] ss:$16 sps:$4 sm:$0xff]  }
 0x145   :  { %2921 = vmatprep.subr.bf16.mxu0 %v4551_v52 }
 0x146   :  { %2109 = vmatpush1.bf16.msra.mxu1 %v4396_v27  ;;  %v4486_v27 = vld [vmem:[#allocation5 + $0x5c8] ss:$16 sps:$4 sm:$0xff]  }
 0x147   :  { %2110 = vmatprep.subr.bf16.mxu1 %v4401_v29  ;;  %v4492_v29 = vld [vmem:[#allocation5 + $0x5e8] ss:$16 sps:$4 sm:$0xff]  }
 0x148   :  { %2922 = vmatpush1.bf16.msra.mxu0 %v4549_v53  ;;  %v4528_v53 = vld [vmem:[#allocation5 + $0x6a8] ss:$16 sps:$4 sm:$0xff]  }
 0x149   :  { %2934 = vmatprep.subr.bf16.mxu0 %v4557_v56 }
 0x14a   :  { %2111 = vmatpush1.bf16.msra.mxu1 %v4399_v30  ;;  %v4500_v30 = vld [vmem:[#allocation5 + $0x60c] ss:$16 sps:$4 sm:$0xff]  }
 0x14b   :  { %2112 = vmatprep.subr.bf16.mxu1 %v4404_v37  ;;  %v4504_v37 = vld [vmem:[#allocation5 + $0x628] ss:$16 sps:$4 sm:$0xff]  }
 0x14e   :  { %2113 = vmatpush1.bf16.msra.mxu1 %v4402_v41  ;;  %v4512_v41 = vld [vmem:[#allocation5 + $0x64c] ss:$16 sps:$4 sm:$0xff]  }
 0x14f   :  { %2114 = vmatprep.subr.bf16.mxu1 %v4407_v44  ;;  %v4516_v44 = vld [vmem:[#allocation5 + $0x668] ss:$16 sps:$4 sm:$0xff]  }
 0x152   :  { %2115 = vmatpush1.bf16.msra.mxu1 %v4405_v45  ;;  %v4524_v45 = vld [vmem:[#allocation5 + $0x68c] ss:$16 sps:$4 sm:$0xff]  }
 0x153   :  { %2116 = vmatprep.subr.bf16.mxu1 %v4410_v50  ;;  %v4530_v50 = vld [vmem:[#allocation5 + $0x6ac] ss:$16 sps:$4 sm:$0xff]  }
 0x156   :  { %2117 = vmatpush1.bf16.msra.mxu1 %v4408_v51 }
 0x157   :  { %2118 = vmatprep.subr.bf16.mxu1 %v4413_v54  ;;  %v4536_v54 = vld [vmem:[#allocation5 + $0x6cc] ss:$16 sps:$4 sm:$0xff]  }
 0x15a   :  { %2119 = vmatpush1.bf16.msra.mxu1 %v4411_v55 }
 0x15b   :  { %2120 = vmatprep.subr.bf16.mxu1 %v4416_v59 }
 0x15e   :  { %2121 = vmatpush1.bf16.msra.mxu1 %v4414_v60 }
 0x15f   :  { %2122 = vmatprep.subr.bf16.mxu1 %v4419_v63 }
 0x162   :  { %2123 = vmatpush1.bf16.msra.mxu1 %v4417_v0 }
 0x163   :  { %2124 = vmatprep.subr.bf16.mxu1 %v4422_v1 }
 0x166   :  { %2125 = vmatpush1.bf16.msra.mxu1 %v4420_v2 }
 0x167   :  { %2126 = vmatprep.subr.bf16.mxu1 %v4425_v3  ;;  %v4534_v3 = vld [vmem:[#allocation5 + $0x6c8] ss:$16 sps:$4 sm:$0xff]  }
 0x16a   :  { %2127 = vmatpush1.bf16.msra.mxu1 %v4423_v4  ;;  %v2263_v4 = vld [vmem:[%s5276_s5] sm:$0xf] }
 0x16b   :  { %2128 = vmatprep.subr.bf16.mxu1 %v4428_v5 }
 0x16e   :  { %2129 = vmatpush1.bf16.msra.mxu1 %v4426_v6 }
 0x16f   :  { %2141 = vmatprep.subr.bf16.mxu1 %v4431_v7 }
 0x171   :  { %2131 = vmatmul.mubr.bf16.vlgmr.msra.gmra.mrb[4].mxu1 %v5169_v14  ;;  %v4444_v14 = vld [vmem:[#allocation5 + $0x4a8] ss:$16 sps:$4 sm:$0xff]  }
 0x172   :  { %2142 = vmatpush1.bf16.msra.mxu1 %v4429_v8  ;;  %2173 = vmatprep.mubr.bf16.mxu1 %v5138_v49  ;;  %v4447_v49 = vld [vmem:[#allocation5 + $0x4c8] ss:$16 sps:$4 sm:$0xff]  }
 0x173   :  { %2143 = vmatprep.subr.bf16.mxu1 %v4434_v9  ;;  %v4542_v9 = vld [vmem:[#allocation5 + $0x6ec] ss:$16 sps:$4 sm:$0xff]  }
 0x176   :  { %2144 = vmatpush1.bf16.msra.mxu1 %v4432_v10 }
 0x177   :  { %2145 = vmatprep.subr.bf16.mxu1 %v4437_v11 }
 0x17a   :  { %2146 = vmatpush1.bf16.msra.mxu1 %v4435_v12 }
 0x17b   :  { %2147 = vmatprep.subr.bf16.mxu1 %v4440_v13 }
 0x17e   :  { %2148 = vmatpush1.bf16.msra.mxu1 %v4438_v32  ;;  %v2268_v32 = vrot.slane %v2263_v4, %v5191_v46 }
 0x17f   :  { %2149 = vmatprep.subr.bf16.mxu1 %v4443_v34 }
 0x182   :  { %2150 = vmatpush1.bf16.msra.mxu1 %v4441_v35 }
 0x183   :  { %2151 = vmatprep.subr.bf16.mxu1 %v4446_v36  ;;  %v4540_v36 = vld [vmem:[#allocation5 + $0x6e8] ss:$16 sps:$4 sm:$0xff]  }
 0x186   :  { %2152 = vmatpush1.bf16.msra.mxu1 %v4444_v14 }
 0x187   :  { %2153 = vmatprep.subr.bf16.mxu1 %v4449_v38 }
 0x18a   :  { %2154 = vmatpush1.bf16.msra.mxu1 %v4447_v49  ;;  %v4548_v49 = vld [vmem:[#allocation5 + $0x70c] ss:$16 sps:$4 sm:$0xff]  }
 0x18b   :  { %2155 = vmatprep.subr.bf16.mxu1 %v4452_v39 }
 0x18e   :  { %2156 = vmatpush1.bf16.msra.mxu1 %v4450_v40 }
 0x18f   :  { %2157 = vmatprep.subr.bf16.mxu1 %v4455_v15  ;;  %v593_v15 = vsub.s32 2, %v5082_v48 }
 0x192   :  { %2158 = vmatpush1.bf16.msra.mxu1 %v4453_v16 }
 0x193   :  { %2159 = vmatprep.subr.bf16.mxu1 %v4458_v18 }
 0x196   :  { %2160 = vmatpush1.bf16.msra.mxu1 %v4456_v19 }
 0x197   :  { %2161 = vmatprep.subr.bf16.mxu1 %v4464_v20 }
 0x19a   :  { %2162 = vmatpush1.bf16.msra.mxu1 %v4462_v57  ;;  %v597_v57 = vsub.s32 3, %v5082_v48 }
 0x19b   :  { %2163 = vmatprep.subr.bf16.mxu1 %v4470_v21 }
 0x19e   :  { %2164 = vmatpush1.bf16.msra.mxu1 %v4468_v22 }
 0x19f   :  { %2165 = vmatprep.subr.bf16.mxu1 %v4476_v61 }
 0x1a2   :  { %2166 = vmatpush1.bf16.msra.mxu1 %v4474_v23  ;;  %v4546_v23 = vld [vmem:[#allocation5 + $0x708] ss:$16 sps:$4 sm:$0xff]  }
 0x1a3   :  { %2167 = vmatprep.subr.bf16.mxu1 %v4482_v24 }
 0x1a6   :  { %2168 = vmatpush1.bf16.msra.mxu1 %v4480_v25 }
 0x1a7   :  { %2169 = vmatprep.subr.bf16.mxu1 %v4488_v26 }
 0x1aa   :  { %2170 = vmatpush1.bf16.msra.mxu1 %v4486_v27 }
 0x1ab   :  { %2171 = vmatprep.subr.bf16.mxu1 %v4494_v17 }
 0x1ae   :  { %2172 = vmatpush1.bf16.msra.mxu1 %v4492_v29  ;;  %v4554_v29 = vld [vmem:[#allocation5 + $0x72c] ss:$16 sps:$4 sm:$0xff]  }
 0x1af   :  { %2184 = vmatprep.subr.bf16.mxu1 %v4500_v30 }
 0x1b1   :  { %2174 = vmatmul.mubr.bf16.vlgmr.msra.gmra.mrb[4].mxu1 %v5151_v58  ;;  %v5196_v58 = vld [vmem:[%s5274_s3] sm:$0xf] }
 0x1b2   :  { %2185 = vmatpush1.bf16.msra.mxu1 %v4498_v31  ;;  %2216 = vmatprep.mubr.bf16.mxu1 %v5155_v62  ;;  %v5199_v62 = vsub.s32 1, %v5082_v48  ;;  %v586_v51 = vrot.slane %v5196_v58, %v5191_v46 }
 0x1b3   :  { %2186 = vmatprep.subr.bf16.mxu1 %v4506_v33 }
 0x1b4   :  { %v590_v52 = vrot.slane %v5196_v58, %v5199_v62  ;;  %v2272_v14 = vrot.slane %v2263_v4, %v5199_v62 }
 0x1b6   :  { %2187 = vmatpush1.bf16.msra.mxu1 %v4504_v37 }
 0x1b7   :  { %2188 = vmatprep.subr.bf16.mxu1 %v4512_v41 }
 0x1ba   :  { %2189 = vmatpush1.bf16.msra.mxu1 %v4510_v42  ;;  %v2276_v42 = vrot.slane %v2263_v4, %v593_v15 }
 0x1bb   :  { %2190 = vmatprep.subr.bf16.mxu1 %v4518_v43 }
 0x1be   :  { %2191 = vmatpush1.bf16.msra.mxu1 %v4516_v44  ;;  %v4552_v44 = vld [vmem:[#allocation5 + $0x728] ss:$16 sps:$4 sm:$0xff]  }
 0x1bf   :  { %2192 = vmatprep.subr.bf16.mxu1 %v4524_v45 }
 0x1c2   :  { %2193 = vmatpush1.bf16.msra.mxu1 %v4522_v47  ;;  %v2280_v47 = vrot.slane %v2263_v4, %v597_v57 }
 0x1c3   :  { %2194 = vmatprep.subr.bf16.mxu1 %v4530_v50 }
 0x1c4   :  { %v1960_v55 = vpop.f32.mrb[0].mxu1 }
 0x1c5   :  { %v2046_v56 = vpop.f32.mrb[0].mxu0  ;;  %v4044_v59 = vadd.f32 %v1960_v55, %v586_v51  ;;  %v1962_v60 = vpop.f32.mrb[1].mxu1 }
 0x1c6   :  { %v2048_v63 = vpop.f32.mrb[1].mxu0  ;;  %v4046_v0 = vadd.f32 %v1962_v60, %v590_v52  ;;  %v1964_v1 = vpop.f32.mrb[2].mxu1  ;;  %2195 = vmatpush1.bf16.msra.mxu1 %v4528_v53 }
 0x1c7   :  { %v2050_v2 = vpop.f32.mrb[2].mxu0  ;;  %v4045_v5 = vadd.f32 %v4044_v59, %v2046_v56  ;;  %v4048_v6 = vadd.f32 %v1964_v1, %v586_v51  ;;  %v1966_v7 = vpop.f32.mrb[3].mxu1  ;;  %2196 = vmatprep.subr.bf16.mxu1 %v4536_v54  ;;  %v4560_v51 = vld [vmem:[#allocation5 + $0x74c] ss:$16 sps:$4 sm:$0xff]   ;;  %v4555_v56 = vld [vmem:[#allocation10 + $0x100] ss:$8 sps:$4 sm:$0xff]  }
 0x1c8   :  { %v2052_v8 = vpop.f32.mrb[3].mxu0  ;;  %v4047_v10 = vadd.f32 %v4046_v0, %v2048_v63  ;;  %v4050_v11 = vadd.f32 %v1966_v7, %v590_v52  ;;  %v4558_v63 = vld [vmem:[#allocation5 + $0x748] ss:$16 sps:$4 sm:$0xff]   ;;  %v4563_v0 = vld [vmem:[#allocation10 + $0x114] ss:$8 sps:$4 sm:$0xff]  }
 0x1c9   :  { %v2235_v12 = vmul.f32 0.2, %v4045_v5  ;;  %v4049_v13 = vadd.f32 %v4048_v6, %v2050_v2  ;;  %vm2227_vm1 = vcmp.gt.f32.partialorder %v4045_v5, 0.0  ;;  %v4561_v7 = vld [vmem:[#allocation10 + $0x110] ss:$8 sps:$4 sm:$0xff]  }
 0x1ca   :  { %v2236_v34 = vmul.f32 0.2, %v4047_v10  ;;  %v4051_v35 = vadd.f32 %v4050_v11, %v2052_v8  ;;  %2197 = vmatpush1.bf16.msra.mxu1 %v4534_v3  ;;  %vm2228_vm2 = vcmp.gt.f32.partialorder %v4047_v10, 0.0  ;;  %v4566_v3 = vld [vmem:[#allocation5 + $0x76c] ss:$16 sps:$4 sm:$0xff]  }
 0x1cb   :  { %vm2231_vm3 = vcmp.gt.f32.partialorder %v4049_v13, 0.0  ;;  %v2239_v38 = vmul.f32 0.2, %v4049_v13  ;;  %2198 = vmatprep.subr.bf16.mxu1 %v4542_v9  ;;  %v5211_v16 = vsel %vm2227_vm1, %v4045_v5, %v2235_v12 }
 0x1cc   :  { %vm2232_vm4 = vcmp.gt.f32.partialorder %v4051_v35, 0.0  ;;  %v2240_v39 = vmul.f32 0.2, %v4051_v35  ;;  %v5219_v24 = vsel %vm2228_vm2, %v4047_v10, %v2236_v34  ;;  %v4564_v10 = vld [vmem:[#allocation5 + $0x768] ss:$16 sps:$4 sm:$0xff]  }
 0x1cd   :  { %v2363_v40 = vpop.f32.mrb[4].mxu0  ;;  %v5213_v18 = vsel %vm2231_vm3, %v4049_v13, %v2239_v38  ;;  %v4569_v13 = vld [vmem:[#allocation10 + $0x124] ss:$8 sps:$4 sm:$0xff]  }
 0x1ce   :  { %v2364_v19 = vadd.f32 %v2363_v40, %v2268_v32  ;;  %v2365_v20 = vpop.f32.mrb[5].mxu0  ;;  %v2251_v21 = vpack.c.bf16 %v5213_v18, %v5211_v16  ;;  %2199 = vmatpush1.bf16.msra.mxu1 %v4540_v36  ;;  %v5221_v25 = vsel %vm2232_vm4, %v4051_v35, %v2240_v39  ;;  %v4572_v35 = vld [vmem:[#allocation5 + $0x78c] ss:$16 sps:$4 sm:$0xff]   ;;  %v4570_v40 = vld [vmem:[#allocation5 + $0x788] ss:$16 sps:$4 sm:$0xff]  }
 0x1cf   :  { %v2366_v22 = vadd.f32 %v2365_v20, %v2272_v14  ;;  %v2367_v61 = vpop.f32.mrb[6].mxu0  ;;  %2200 = vmatprep.subr.bf16.mxu1 %v4548_v49  ;;  %v2252_v30 = vpack.c.bf16 %v5221_v25, %v5219_v24  ;;  %v4567_v49 = vld [vmem:[#allocation10 + $0x120] ss:$8 sps:$4 sm:$0xff]   ;;  %v4578_v20 = vld [vmem:[#allocation5 + $0x7ac] ss:$16 sps:$4 sm:$0xff]  }
 0x1d0   :  { %vm2415_vm5 = vcmp.gt.f32.partialorder %v2364_v19, 0.0  ;;  %v2423_v26 = vmul.f32 0.2, %v2364_v19  ;;  %v2368_v27 = vadd.f32 %v2367_v61, %v2268_v32  ;;  %v2369_v17 = vpop.f32.mrb[7].mxu0  ;;  %v4576_v61 = vld [vmem:[#allocation5 + $0x7a8] ss:$16 sps:$4 sm:$0xff]  }
 0x1d1   :  { %vm2416_vm6 = vcmp.gt.f32.partialorder %v2366_v22, 0.0  ;;  %v2424_v31 = vmul.f32 0.2, %v2366_v22  ;;  %v2370_v33 = vadd.f32 %v2369_v17, %v2272_v14  ;;  %v4582_v17 = vld [vmem:[#allocation5 + $0x7c8] ss:$16 sps:$4 sm:$0xff]  }
 0x1d2   :  { %v2431_v37 = vsel %vm2415_vm5, %v2364_v19, %v2423_v26  ;;  %vm2419_vm7 = vcmp.gt.f32.partialorder %v2368_v27, 0.0  ;;  %v2427_v41 = vmul.f32 0.2, %v2368_v27  ;;  %2201 = vmatpush1.bf16.msra.mxu1 %v4546_v23  ;;  %v4575_v19 = vld [vmem:[#allocation10 + $0x134] ss:$8 sps:$4 sm:$0xff]  }
 0x1d3   :  { %vm2420_vm8 = vcmp.gt.f32.partialorder %v2370_v33, 0.0  ;;  %v2428_v43 = vmul.f32 0.2, %v2370_v33  ;;  %v2432_v45 = vsel %vm2416_vm6, %v2366_v22, %v2424_v31  ;;  %2202 = vmatprep.subr.bf16.mxu1 %v4554_v29  ;;  %v4573_v22 = vld [vmem:[#allocation10 + $0x130] ss:$8 sps:$4 sm:$0xff]  }
 0x1d4   :  { %v2435_v50 = vsel %vm2419_vm7, %v2368_v27, %v2427_v41  ;;  %v4581_v23 = vld [vmem:[#allocation10 + $0x144] ss:$8 sps:$4 sm:$0xff]   ;;  %v4579_v27 = vld [vmem:[#allocation10 + $0x140] ss:$8 sps:$4 sm:$0xff]   ;;  %v4587_v29 = vld [vmem:[#allocation10 + $0x154] ss:$8 sps:$4 sm:$0xff]  }
 0x1d5   :  { %v2439_v52 = vpack.c.bf16 %v2435_v50, %v2431_v37  ;;  %v2436_v53 = vsel %vm2420_vm8, %v2370_v33, %v2428_v43  ;;  %v2406_v54 = vpop.f32.mrb[8].mxu0  ;;  %v4584_v26 = vld [vmem:[#allocation5 + $0x7cc] ss:$16 sps:$4 sm:$0xff]   ;;  %v4585_v33 = vld [vmem:[#allocation10 + $0x150] ss:$8 sps:$4 sm:$0xff]  }
 0x1d6   :  { %v2440_v55 = vpack.c.bf16 %v2436_v53, %v2432_v45  ;;  %v2407_v59 = vadd.f32 %v2406_v54, %v2276_v42  ;;  %v2408_v60 = vpop.f32.mrb[9].mxu0  ;;  %2203 = vmatpush1.bf16.msra.mxu1 %v4552_v44  ;;  %v4590_v31 = vld [vmem:[#allocation5 + $0x7ec] ss:$16 sps:$4 sm:$0xff]   ;;  %v4588_v37 = vld [vmem:[#allocation5 + $0x7e8] ss:$16 sps:$4 sm:$0xff]  }
 0x1d7   :  { %v2409_v1 = vadd.f32 %v2408_v60, %v2280_v47  ;;  %v2410_v2 = vpop.f32.mrb[10].mxu0  ;;  %2204 = vmatprep.subr.bf16.mxu1 %v4560_v51  ;;  %v4593_v41 = vld [vmem:[#allocation10 + $0x164] ss:$8 sps:$4 sm:$0xff]   ;;  %v4596_v43 = vld [vmem:[#allocation10 + $0x174] ss:$8 sps:$4 sm:$0xff]  }
 0x1d8   :  { %2923 = vmatprep.mubr.bf16.mxu0 %v2440_v55  ;;  %vm2417_vm9 = vcmp.gt.f32.partialorder %v2407_v59, 0.0  ;;  %v2425_v4 = vmul.f32 0.2, %v2407_v59  ;;  %v2411_v5 = vadd.f32 %v2410_v2, %v2276_v42  ;;  %v2412_v6 = vpop.f32.mrb[11].mxu0  ;;  %v4591_v42 = vld [vmem:[#allocation10 + $0x160] ss:$8 sps:$4 sm:$0xff]  }
 0x1d9   :  { %2924 = vmatmul.mubr.bf16.vlgmr.msra.gmra.mrb[12].mxu0 %v2439_v52  ;;  %vm2418_vm10 = vcmp.gt.f32.partialorder %v2409_v1, 0.0  ;;  %v2426_v8 = vmul.f32 0.2, %v2409_v1  ;;  %v2413_v9 = vadd.f32 %v2412_v6, %v2280_v47  ;;  %v4594_v44 = vld [vmem:[#allocation10 + $0x170] ss:$8 sps:$4 sm:$0xff]  }
 0x1da   :  { %2935 = vmatpush1.bf16.msra.mxu0 %v4555_v56  ;;  %v5229_v11 = vsel %vm2417_vm9, %v2407_v59, %v2425_v4  ;;  %vm2421_vm11 = vcmp.gt.f32.partialorder %v2411_v5, 0.0  ;;  %v2429_v12 = vmul.f32 0.2, %v2411_v5  ;;  %2205 = vmatpush1.bf16.msra.mxu1 %v4558_v63  ;;  %v4599_v45 = vld [vmem:[#allocation10 + $0x184] ss:$8 sps:$4 sm:$0xff]  }
 0x1db   :  { %2936 = vmatprep.subr.bf16.mxu0 %v4563_v0  ;;  %vm2422_vm12 = vcmp.gt.f32.partialorder %v2413_v9, 0.0  ;;  %v2430_v32 = vmul.f32 0.2, %v2413_v9  ;;  %v2434_v34 = vsel %vm2418_vm10, %v2409_v1, %v2426_v8  ;;  %2206 = vmatprep.subr.bf16.mxu1 %v4566_v3  ;;  %v4597_v47 = vld [vmem:[#allocation10 + $0x180] ss:$8 sps:$4 sm:$0xff]  }
 0x1dc   :  { %v5231_v36 = vsel %vm2421_vm11, %v2411_v5, %v2429_v12  ;;  %v4602_v50 = vld [vmem:[#allocation10 + $0x194] ss:$8 sps:$4 sm:$0xff]   ;;  %v4600_v51 = vld [vmem:[#allocation10 + $0x190] ss:$8 sps:$4 sm:$0xff]   ;;  %v4605_v52 = vld [vmem:[#allocation10 + $0x1a4] ss:$8 sps:$4 sm:$0xff]  }
 0x1dd   :  { %v2441_v14 = vpack.c.bf16 %v5231_v36, %v5229_v11  ;;  %v2438_v38 = vsel %vm2422_vm12, %v2413_v9, %v2430_v32  ;;  %v4603_v53 = vld [vmem:[#allocation10 + $0x1a0] ss:$8 sps:$4 sm:$0xff]   ;;  %v4608_v54 = vld [vmem:[#allocation10 + $0x1b4] ss:$8 sps:$4 sm:$0xff]   ;;  %v4606_v55 = vld [vmem:[#allocation10 + $0x1b0] ss:$8 sps:$4 sm:$0xff]  }
 0x1de   :  { %2937 = vmatpush1.bf16.msra.mxu0 %v4561_v7  ;;  %v2442_v39 = vpack.c.bf16 %v2438_v38, %v2434_v34  ;;  %2207 = vmatpush1.bf16.msra.mxu1 %v4564_v10  ;;  %v4611_v56 = vld [vmem:[#allocation10 + $0x1c4] ss:$8 sps:$4 sm:$0xff]   ;;  %v4614_v59 = vld [vmem:[#allocation10 + $0x1d4] ss:$8 sps:$4 sm:$0xff]   ;;  %v4612_v60 = vld [vmem:[#allocation10 + $0x1d0] ss:$8 sps:$4 sm:$0xff]  }
 0x1df   :  { %2938 = vmatprep.subr.bf16.mxu0 %v4569_v13  ;;  %2208 = vmatprep.subr.bf16.mxu1 %v4572_v35  ;;  %v4617_v63 = vld [vmem:[#allocation10 + $0x1e4] ss:$8 sps:$4 sm:$0xff]   ;;  %v4615_v0 = vld [vmem:[#allocation10 + $0x1e0] ss:$8 sps:$4 sm:$0xff]   ;;  %v4620_v1 = vld [vmem:[#allocation10 + $0x1f4] ss:$8 sps:$4 sm:$0xff]  }
 0x1e0   :  { %2966 = vmatprep.mubr.bf16.mxu0 %v2442_v39  ;;  %v4618_v2 = vld [vmem:[#allocation10 + $0x1f0] ss:$8 sps:$4 sm:$0xff]   ;;  %v4623_v3 = vld [vmem:[#allocation8 + $0x4] ss:$8 sps:$4 sm:$0xff]   ;;  %v4621_v4 = vld [vmem:[#allocation8] ss:$8 sps:$4 sm:$0xff]  }
 0x1e1   :  { %v4626_v5 = vld [vmem:[#allocation8 + $0x14] ss:$8 sps:$4 sm:$0xff]   ;;  %v4624_v6 = vld [vmem:[#allocation8 + $0x10] ss:$8 sps:$4 sm:$0xff]   ;;  %v4629_v7 = vld [vmem:[#allocation8 + $0x24] ss:$8 sps:$4 sm:$0xff]  }
 0x1e2   :  { %2939 = vmatpush1.bf16.msra.mxu0 %v4567_v49  ;;  %2209 = vmatpush1.bf16.msra.mxu1 %v4570_v40  ;;  %v4627_v8 = vld [vmem:[#allocation8 + $0x20] ss:$8 sps:$4 sm:$0xff]   ;;  %v4632_v9 = vld [vmem:[#allocation8 + $0x34] ss:$8 sps:$4 sm:$0xff]   ;;  %v4630_v10 = vld [vmem:[#allocation8 + $0x30] ss:$8 sps:$4 sm:$0xff]  }
 0x1e3   :  { %2940 = vmatprep.subr.bf16.mxu0 %v4575_v19  ;;  %2210 = vmatprep.subr.bf16.mxu1 %v4578_v20  ;;  %v4635_v12 = vld [vmem:[#allocation8 + $0x44] ss:$8 sps:$4 sm:$0xff]   ;;  %v4633_v13 = vld [vmem:[#allocation8 + $0x40] ss:$8 sps:$4 sm:$0xff]   ;;  %v4638_v11 = vld [vmem:[#allocation8 + $0x54] ss:$8 sps:$4 sm:$0xff]  }
 0x1e4   :  { %v4636_v32 = vld [vmem:[#allocation8 + $0x50] ss:$8 sps:$4 sm:$0xff]   ;;  %v4641_v24 = vld [vmem:[#allocation8 + $0x64] ss:$8 sps:$4 sm:$0xff]   ;;  %v4639_v25 = vld [vmem:[#allocation8 + $0x60] ss:$8 sps:$4 sm:$0xff]  }
 0x1e5   :  { %v4642_v34 = vld [vmem:[#allocation8 + $0x70] ss:$8 sps:$4 sm:$0xff]   ;;  %v4647_v35 = vld [vmem:[#allocation8 + $0x84] ss:$8 sps:$4 sm:$0xff]   ;;  %v4645_v36 = vld [vmem:[#allocation8 + $0x80] ss:$8 sps:$4 sm:$0xff]  }
 0x1e6   :  { %2941 = vmatpush1.bf16.msra.mxu0 %v4573_v22  ;;  %2211 = vmatpush1.bf16.msra.mxu1 %v4576_v61  ;;  %v4648_v38 = vld [vmem:[#allocation8 + $0x90] ss:$8 sps:$4 sm:$0xff]   ;;  %v4653_v49 = vld [vmem:[#allocation8 + $0xa4] ss:$8 sps:$4 sm:$0xff]   ;;  %v4651_v39 = vld [vmem:[#allocation8 + $0xa0] ss:$8 sps:$4 sm:$0xff]  }
 0x1e7   :  { %2942 = vmatprep.subr.bf16.mxu0 %v4581_v23  ;;  %2212 = vmatprep.subr.bf16.mxu1 %v4584_v26  ;;  %v4656_v40 = vld [vmem:[#allocation8 + $0xb4] ss:$8 sps:$4 sm:$0xff]   ;;  %v4654_v19 = vld [vmem:[#allocation8 + $0xb0] ss:$8 sps:$4 sm:$0xff]   ;;  %v4659_v20 = vld [vmem:[#allocation8 + $0xc4] ss:$8 sps:$4 sm:$0xff]  }
 0x1e8   :  { %v4657_v22 = vld [vmem:[#allocation8 + $0xc0] ss:$8 sps:$4 sm:$0xff]   ;;  %v4662_v61 = vld [vmem:[#allocation8 + $0xd4] ss:$8 sps:$4 sm:$0xff]   ;;  %v4660_v23 = vld [vmem:[#allocation8 + $0xd0] ss:$8 sps:$4 sm:$0xff]  }
 0x1e9   :  { %v4665_v26 = vld [vmem:[#allocation8 + $0xe4] ss:$8 sps:$4 sm:$0xff]   ;;  %v4678_v16 = vld [vmem:[#allocation8 + $0x130] ss:$8 sps:$4 sm:$0xff]  }
 0x1ea   :  { %2943 = vmatpush1.bf16.msra.mxu0 %v4579_v27  ;;  %2213 = vmatpush1.bf16.msra.mxu1 %v4582_v17  ;;  %v4663_v27 = vld [vmem:[#allocation8 + $0xe0] ss:$8 sps:$4 sm:$0xff]   ;;  %v4668_v17 = vld [vmem:[#allocation8 + $0xf4] ss:$8 sps:$4 sm:$0xff]   ;;  %v4683_v18 = vld [vmem:[#allocation8 + $0x144] ss:$8 sps:$4 sm:$0xff]  }
 0x1eb   :  { %2944 = vmatprep.subr.bf16.mxu0 %v4587_v29  ;;  %2214 = vmatprep.subr.bf16.mxu1 %v4590_v31  ;;  %v4717_v29 = vld [vmem:[#allocation11 + $0x40] sm:$0xff]  }
 0x1ec   :  { %v4718_v31 = vld [vmem:[#allocation11] sm:$0xff]  }
 0x1ee   :  { %2945 = vmatpush1.bf16.msra.mxu0 %v4585_v33  ;;  %2215 = vmatpush1.bf16.msra.mxu1 %v4588_v37  ;;  %v4719_v33 = vld [vmem:[#allocation11 + $0x48] sm:$0xff]   ;;  %v4666_v37 = vld [vmem:[#allocation8 + $0xf0] ss:$8 sps:$4 sm:$0xff]  }
 0x1ef   :  { %2946 = vmatprep.subr.bf16.mxu0 %v4593_v41  ;;  %v4671_v41 = vld [vmem:[#allocation8 + $0x104] ss:$8 sps:$4 sm:$0xff]   ;;  %4022 = vmatprep.subr.bf16.mxu1 %v4717_v29 }
 0x1f1   :  { %2217 = vmatmul.mubr.bf16.vlgmr.msra.gmra.mrb[4].mxu1 %v5171_v28  ;;  %v4609_v28 = vld [vmem:[#allocation10 + $0x1c0] ss:$8 sps:$4 sm:$0xff]  }
 0x1f2   :  { %2947 = vmatpush1.bf16.msra.mxu0 %v4591_v42  ;;  %4023 = vmatpush3.bf16.msra.mxu1 %v4718_v31  ;;  %v4720_v42 = vld [vmem:[#allocation11 + $0x8] sm:$0xff]  }
 0x1f3   :  { %2948 = vmatprep.subr.bf16.mxu0 %v4596_v43  ;;  %4024 = vmatprep.subr.bf16.mxu1 %v4719_v33  ;;  %v4721_v43 = vld [vmem:[#allocation11 + $0x50] sm:$0xff]   ;;  %v4727_v31 = vld [vmem:[#allocation11 + $0x68] sm:$0xff]  }
 0x1f4   :  { %v4728_v33 = vld [vmem:[#allocation11 + $0x28] sm:$0xff]  }
 0x1f6   :  { %2949 = vmatpush1.bf16.msra.mxu0 %v4594_v44  ;;  %v4669_v44 = vld [vmem:[#allocation8 + $0x100] ss:$8 sps:$4 sm:$0xff]   ;;  %4025 = vmatpush3.bf16.msra.mxu1 %v4720_v42  ;;  %v4731_v42 = vld [vmem:[#allocation11 + $0x78] sm:$0xff]  }
 0x1f7   :  { %2950 = vmatprep.subr.bf16.mxu0 %v4599_v45  ;;  %v4674_v45 = vld [vmem:[#allocation8 + $0x114] ss:$8 sps:$4 sm:$0xff]   ;;  %4026 = vmatprep.subr.bf16.mxu1 %v4721_v43 }
 0x1f8   :  { %v4732_v43 = vld [vmem:[#allocation11 + $0x38] sm:$0xff]  }
 0x1fa   :  { %2951 = vmatpush1.bf16.msra.mxu0 %v4597_v47  ;;  %v4722_v47 = vld [vmem:[#allocation11 + $0x10] sm:$0xff]  }
 0x1fb   :  { %2952 = vmatprep.subr.bf16.mxu0 %v4602_v50  ;;  %v4723_v50 = vld [vmem:[#allocation11 + $0x58] sm:$0xff]   ;;  %4027 = vmatpush3.bf16.msra.mxu1 %v4722_v47 }
 0x1fc   :  { %4028 = vmatprep.subr.bf16.mxu1 %v4723_v50 }
 0x1fe   :  { %2953 = vmatpush1.bf16.msra.mxu0 %v4600_v51  ;;  %v4672_v51 = vld [vmem:[#allocation8 + $0x110] ss:$8 sps:$4 sm:$0xff]  }
 0x1ff   :  { %2954 = vmatprep.subr.bf16.mxu0 %v4605_v52  ;;  %v4677_v52 = vld [vmem:[#allocation8 + $0x124] ss:$8 sps:$4 sm:$0xff]  }
 0x202   :  { %2955 = vmatpush1.bf16.msra.mxu0 %v4603_v53  ;;  %v4724_v53 = vld [vmem:[#allocation11 + $0x18] sm:$0xff]  }
 0x203   :  { %2956 = vmatprep.subr.bf16.mxu0 %v4608_v54  ;;  %v4725_v54 = vld [vmem:[#allocation11 + $0x60] sm:$0xff]   ;;  %4029 = vmatpush3.bf16.msra.mxu1 %v4724_v53 }
 0x204   :  { %4030 = vmatprep.subr.bf16.mxu1 %v4725_v54 }
 0x206   :  { %2957 = vmatpush1.bf16.msra.mxu0 %v4606_v55  ;;  %v4675_v55 = vld [vmem:[#allocation8 + $0x120] ss:$8 sps:$4 sm:$0xff]  }
 0x207   :  { %2958 = vmatprep.subr.bf16.mxu0 %v4611_v56  ;;  %v4680_v56 = vld [vmem:[#allocation8 + $0x134] ss:$8 sps:$4 sm:$0xff]  }
 0x20a   :  { %2959 = vmatpush1.bf16.msra.mxu0 %v4609_v28  ;;  %v4726_v28 = vld [vmem:[#allocation11 + $0x20] sm:$0xff]  }
 0x20b   :  { %2960 = vmatprep.subr.bf16.mxu0 %v4614_v59  ;;  %4031 = vmatpush3.bf16.msra.mxu1 %v4726_v28  ;;  %v4686_v59 = vld [vmem:[#allocation8 + $0x154] ss:$8 sps:$4 sm:$0xff]  }
 0x20c   :  { %4032 = vmatprep.subr.bf16.mxu1 %v4727_v31 }
 0x20e   :  { %2961 = vmatpush1.bf16.msra.mxu0 %v4612_v60  ;;  %v4684_v60 = vld [vmem:[#allocation8 + $0x150] ss:$8 sps:$4 sm:$0xff]  }
 0x20f   :  { %2962 = vmatprep.subr.bf16.mxu0 %v4617_v63  ;;  %v4689_v63 = vld [vmem:[#allocation8 + $0x164] ss:$8 sps:$4 sm:$0xff]   ;;  %4033 = vmatpush3.bf16.msra.mxu1 %v4728_v33 }
 0x212   :  { %2963 = vmatpush1.bf16.msra.mxu0 %v4615_v0  ;;  %v4687_v0 = vld [vmem:[#allocation8 + $0x160] ss:$8 sps:$4 sm:$0xff]  }
 0x213   :  { %2964 = vmatprep.subr.bf16.mxu0 %v4620_v1  ;;  %v4692_v1 = vld [vmem:[#allocation8 + $0x174] ss:$8 sps:$4 sm:$0xff]  }
 0x216   :  { %2965 = vmatpush1.bf16.msra.mxu0 %v4618_v2  ;;  %v4690_v2 = vld [vmem:[#allocation8 + $0x170] ss:$8 sps:$4 sm:$0xff]  }
 0x217   :  { %3297 = vmatprep.subr.bf16.mxu0 %v4623_v3  ;;  %v4695_v3 = vld [vmem:[#allocation8 + $0x184] ss:$8 sps:$4 sm:$0xff]  }
 0x219   :  { %2967 = vmatmul.mubr.bf16.vlgmr.msra.gmra.mrb[12].mxu0 %v2441_v14  ;;  %v4650_v14 = vld [vmem:[#allocation8 + $0x94] ss:$8 sps:$4 sm:$0xff]  }
 0x21a   :  { %3298 = vmatpush1.bf16.msra.mxu0 %v4621_v4  ;;  %3329 = vmatprep.mubr.bf16.mxu0 %v2252_v30  ;;  %v4644_v30 = vld [vmem:[#allocation8 + $0x74] ss:$8 sps:$4 sm:$0xff]   ;;  %v4693_v4 = vld [vmem:[#allocation8 + $0x180] ss:$8 sps:$4 sm:$0xff]  }
 0x21b   :  { %3299 = vmatprep.subr.bf16.mxu0 %v4626_v5  ;;  %v4698_v5 = vld [vmem:[#allocation8 + $0x194] ss:$8 sps:$4 sm:$0xff]  }
 0x21e   :  { %3300 = vmatpush1.bf16.msra.mxu0 %v4624_v6  ;;  %v4696_v6 = vld [vmem:[#allocation8 + $0x190] ss:$8 sps:$4 sm:$0xff]  }
 0x21f   :  { %3301 = vmatprep.subr.bf16.mxu0 %v4629_v7  ;;  %v4701_v7 = vld [vmem:[#allocation8 + $0x1a4] ss:$8 sps:$4 sm:$0xff]  }
 0x222   :  { %3302 = vmatpush1.bf16.msra.mxu0 %v4627_v8  ;;  %v4699_v8 = vld [vmem:[#allocation8 + $0x1a0] ss:$8 sps:$4 sm:$0xff]  }
 0x223   :  { %3303 = vmatprep.subr.bf16.mxu0 %v4632_v9  ;;  %v4704_v9 = vld [vmem:[#allocation8 + $0x1b4] ss:$8 sps:$4 sm:$0xff]  }
 0x226   :  { %3304 = vmatpush1.bf16.msra.mxu0 %v4630_v10  ;;  %v4702_v10 = vld [vmem:[#allocation8 + $0x1b0] ss:$8 sps:$4 sm:$0xff]  }
 0x227   :  { %3305 = vmatprep.subr.bf16.mxu0 %v4635_v12  ;;  %v4707_v12 = vld [vmem:[#allocation8 + $0x1c4] ss:$8 sps:$4 sm:$0xff]  }
 0x22a   :  { %3306 = vmatpush1.bf16.msra.mxu0 %v4633_v13  ;;  %v4705_v13 = vld [vmem:[#allocation8 + $0x1c0] ss:$8 sps:$4 sm:$0xff]  }
 0x22b   :  { %3307 = vmatprep.subr.bf16.mxu0 %v4638_v11  ;;  %v4710_v11 = vld [vmem:[#allocation8 + $0x1d4] ss:$8 sps:$4 sm:$0xff]  }
 0x22e   :  { %3308 = vmatpush1.bf16.msra.mxu0 %v4636_v32  ;;  %v4708_v32 = vld [vmem:[#allocation8 + $0x1d0] ss:$8 sps:$4 sm:$0xff]  }
 0x22f   :  { %3309 = vmatprep.subr.bf16.mxu0 %v4641_v24  ;;  %v4713_v24 = vld [vmem:[#allocation8 + $0x1e4] ss:$8 sps:$4 sm:$0xff]  }
 0x232   :  { %3310 = vmatpush1.bf16.msra.mxu0 %v4639_v25  ;;  %v4711_v25 = vld [vmem:[#allocation8 + $0x1e0] ss:$8 sps:$4 sm:$0xff]  }
 0x233   :  { %3311 = vmatprep.subr.bf16.mxu0 %v4644_v30  ;;  %v4716_v30 = vld [vmem:[#allocation8 + $0x1f4] ss:$8 sps:$4 sm:$0xff]  }
 0x236   :  { %3312 = vmatpush1.bf16.msra.mxu0 %v4642_v34  ;;  %v4714_v34 = vld [vmem:[#allocation8 + $0x1f0] ss:$8 sps:$4 sm:$0xff]  }
 0x237   :  { %3313 = vmatprep.subr.bf16.mxu0 %v4647_v35  ;;  %v594_v35 = vrot.slane %v5196_v58, %v593_v15 }
 0x23a   :  { %3314 = vmatpush1.bf16.msra.mxu0 %v4645_v36  ;;  %v598_v36 = vrot.slane %v5196_v58, %v597_v57 }
 0x23b   :  { %3315 = vmatprep.subr.bf16.mxu0 %v4650_v14 }
 0x23e   :  { %3316 = vmatpush1.bf16.msra.mxu0 %v4648_v38 }
 0x23f   :  { %3317 = vmatprep.subr.bf16.mxu0 %v4653_v49 }
 0x242   :  { %3318 = vmatpush1.bf16.msra.mxu0 %v4651_v39 }
 0x243   :  { %3319 = vmatprep.subr.bf16.mxu0 %v4656_v40 }
 0x246   :  { %3320 = vmatpush1.bf16.msra.mxu0 %v4654_v19 }
 0x247   :  { %3321 = vmatprep.subr.bf16.mxu0 %v4659_v20 }
 0x24a   :  { %3322 = vmatpush1.bf16.msra.mxu0 %v4657_v22 }
 0x24b   :  { %3323 = vmatprep.subr.bf16.mxu0 %v4662_v61 }
 0x24e   :  { %3324 = vmatpush1.bf16.msra.mxu0 %v4660_v23 }
 0x24f   :  { %3325 = vmatprep.subr.bf16.mxu0 %v4665_v26 }
 0x252   :  { %3326 = vmatpush1.bf16.msra.mxu0 %v4663_v27 }
 0x253   :  { %3327 = vmatprep.subr.bf16.mxu0 %v4668_v17 }
 0x256   :  { %3328 = vmatpush1.bf16.msra.mxu0 %v4666_v37  ;;  %v4729_v37 = vld [vmem:[#allocation11 + $0x70] sm:$0xff]  }
 0x257   :  { %3340 = vmatprep.subr.bf16.mxu0 %v4671_v41  ;;  %v4730_v41 = vld [vmem:[#allocation11 + $0x30] sm:$0xff]   ;;  %4034 = vmatprep.subr.bf16.mxu1 %v4729_v37 }
 0x258   :  { %4035 = vmatpush3.bf16.msra.mxu1 %v4730_v41 }
 0x259   :  { %3330 = vmatmul.mubr.bf16.vlgmr.msra.gmra.mrb[12].mxu0 %v2251_v21  ;;  %v4681_v21 = vld [vmem:[#allocation8 + $0x140] ss:$8 sps:$4 sm:$0xff]   ;;  %4036 = vmatprep.subr.bf16.mxu1 %v4731_v42 }
 0x25a   :  { %3341 = vmatpush1.bf16.msra.mxu0 %v4669_v44  ;;  %v3383_v44 = vld [vmem:[%s5279_s8] sm:$0x3] }
 0x25b   :  { %3342 = vmatprep.subr.bf16.mxu0 %v4674_v45  ;;  %v3388_v45 = vrot.slane %v3383_v44, %v5191_v46  ;;  %v3392_v47 = vrot.slane %v3383_v44, %v5199_v62 }
 0x25c   :  { %4037 = vmatpush3.bf16.msra.mxu1 %v4732_v43 }
 0x25e   :  { %3343 = vmatpush1.bf16.msra.mxu0 %v4672_v51 }
 0x25f   :  { %3344 = vmatprep.subr.bf16.mxu0 %v4677_v52 }
 0x262   :  { %3345 = vmatpush1.bf16.msra.mxu0 %v4675_v55 }
 0x263   :  { %3346 = vmatprep.subr.bf16.mxu0 %v4680_v56 }
 0x266   :  { %3347 = vmatpush1.bf16.msra.mxu0 %v4678_v16 }
 0x267   :  { %3348 = vmatprep.subr.bf16.mxu0 %v4683_v18 }
 0x26a   :  { %3349 = vmatpush1.bf16.msra.mxu0 %v4681_v21 }
 0x26b   :  { %3350 = vmatprep.subr.bf16.mxu0 %v4686_v59 }
 0x26e   :  { %3351 = vmatpush1.bf16.msra.mxu0 %v4684_v60 }
 0x26f   :  { %3352 = vmatprep.subr.bf16.mxu0 %v4689_v63 }
 0x272   :  { %3353 = vmatpush1.bf16.msra.mxu0 %v4687_v0 }
 0x273   :  { %3354 = vmatprep.subr.bf16.mxu0 %v4692_v1 }
 0x276   :  { %3355 = vmatpush1.bf16.msra.mxu0 %v4690_v2 }
 0x277   :  { %3356 = vmatprep.subr.bf16.mxu0 %v4695_v3  ;;  %v4005_v3 = vld [vmem:[%s5281_s10] ss:$0 sm:$0xff] }
 0x27a   :  { %3357 = vmatpush1.bf16.msra.mxu0 %v4693_v4 }
 0x27b   :  { %3358 = vmatprep.subr.bf16.mxu0 %v4698_v5 }
 0x27e   :  { %3359 = vmatpush1.bf16.msra.mxu0 %v4696_v6 }
 0x27f   :  { %3360 = vmatprep.subr.bf16.mxu0 %v4701_v7 }
 0x282   :  { %3361 = vmatpush1.bf16.msra.mxu0 %v4699_v8 }
 0x283   :  { %3362 = vmatprep.subr.bf16.mxu0 %v4704_v9 }
 0x286   :  { %3363 = vmatpush1.bf16.msra.mxu0 %v4702_v10 }
 0x287   :  { %3364 = vmatprep.subr.bf16.mxu0 %v4707_v12 }
 0x28a   :  { %3365 = vmatpush1.bf16.msra.mxu0 %v4705_v13 }
 0x28b   :  { %3366 = vmatprep.subr.bf16.mxu0 %v4710_v11 }
 0x28e   :  { %3367 = vmatpush1.bf16.msra.mxu0 %v4708_v32 }
 0x28f   :  { %3368 = vmatprep.subr.bf16.mxu0 %v4713_v24 }
 0x292   :  { %3369 = vmatpush1.bf16.msra.mxu0 %v4711_v25 }
 0x293   :  { %3370 = vmatprep.subr.bf16.mxu0 %v4716_v30 }
 0x296   :  { %3371 = vmatpush1.bf16.msra.mxu0 %v4714_v34 }
 0x2c4   :  { %v2218_v14 = vpop.f32.mrb[4].mxu1 }
 0x2c5   :  { %v4052_v38 = vadd.f32 %v2218_v14, %v594_v35  ;;  %v2220_v49 = vpop.f32.mrb[5].mxu1 }
 0x2c6   :  { %v4053_v39 = vadd.f32 %v2220_v49, %v598_v36  ;;  %v2222_v40 = vpop.f32.mrb[6].mxu1 }
 0x2c7   :  { %v2237_v19 = vmul.f32 0.2, %v4052_v38  ;;  %v4054_v20 = vadd.f32 %v2222_v40, %v594_v35  ;;  %v2224_v22 = vpop.f32.mrb[7].mxu1  ;;  %vm2229_vm13 = vcmp.gt.f32.partialorder %v4052_v38, 0.0 }
 0x2c8   :  { %v2238_v61 = vmul.f32 0.2, %v4053_v39  ;;  %v4055_v23 = vadd.f32 %v2224_v22, %v598_v36  ;;  %vm2230_vm14 = vcmp.gt.f32.partialorder %v4053_v39, 0.0 }
 0x2c9   :  { %vm2233_vm15 = vcmp.gt.f32.partialorder %v4054_v20, 0.0  ;;  %v2241_v26 = vmul.f32 0.2, %v4054_v20  ;;  %v2245_v27 = vsel %vm2229_vm13, %v4052_v38, %v2237_v19 }
 0x2ca   :  { %vm2234_vm0 = vcmp.gt.f32.partialorder %v4055_v23, 0.0  ;;  %v2242_v15 = vmul.f32 0.2, %v4055_v23  ;;  %v2246_v58 = vsel %vm2230_vm14, %v4053_v39, %v2238_v61 }
 0x2cb   :  { %v2249_v48 = vsel %vm2233_vm15, %v4054_v20, %v2241_v26 }
 0x2cc   :  { %v2253_v17 = vpack.c.bf16 %v2249_v48, %v2245_v27  ;;  %v2250_v57 = vsel %vm2234_vm0, %v4055_v23, %v2242_v15 }
 0x2cd   :  { %v2254_v29 = vpack.c.bf16 %v2250_v57, %v2246_v58 }
 0x2cf   :  { %3372 = vmatprep.mubr.bf16.mxu0 %v2254_v29 }
 0x2d0   :  { %3373 = vmatmul.mubr.bf16.vlgmr.msra.gmra.mrb[12].mxu0 %v2253_v17 }
 0x3a3   :  { %v3374_v50 = vpop.f32.mrb[12].mxu0 }
 0x3a4   :  { %v3395_v51 = vadd.f32 %v3388_v45, %v3374_v50  ;;  %v3376_v52 = vpop.f32.mrb[13].mxu0 }
 0x3a5   :  { %v3396_v53 = vadd.f32 %v3392_v47, %v3376_v52  ;;  %v3378_v54 = vpop.f32.mrb[14].mxu0 }
 0x3a6   :  { %v3403_v55 = vmul.f32 0.2, %v3395_v51  ;;  %v3397_v56 = vadd.f32 %v3388_v45, %v3378_v54  ;;  %v3380_v28 = vpop.f32.mrb[15].mxu0  ;;  %vm3399_vm1 = vcmp.gt.f32.partialorder %v3395_v51, 0.0 }
 0x3a7   :  { %v3404_v16 = vmul.f32 0.2, %v3396_v53  ;;  %v3398_v18 = vadd.f32 %v3392_v47, %v3380_v28  ;;  %vm3400_vm2 = vcmp.gt.f32.partialorder %v3396_v53, 0.0 }
 0x3a8   :  { %vm3401_vm3 = vcmp.gt.f32.partialorder %v3397_v56, 0.0  ;;  %v3405_v21 = vmul.f32 0.2, %v3397_v56  ;;  %v3407_v60 = vsel %vm3399_vm1, %v3395_v51, %v3403_v55 }
 0x3a9   :  { %vm3402_vm4 = vcmp.gt.f32.partialorder %v3398_v18, 0.0  ;;  %v3406_v59 = vmul.f32 0.2, %v3398_v18  ;;  %v3408_v62 = vsel %vm3400_vm2, %v3396_v53, %v3404_v16 }
 0x3aa   :  { %v3409_v46 = vsel %vm3401_vm3, %v3397_v56, %v3405_v21 }
 0x3ab   :  { %v3411_v63 = vpack.c.bf16 %v3409_v46, %v3407_v60  ;;  %v3410_v0 = vsel %vm3402_vm4, %v3398_v18, %v3406_v59 }
 0x3ac   :  { %v3412_v1 = vpack.c.bf16 %v3410_v0, %v3408_v62 }
 0x3ae   :  { %3580 = vmatprep.mubr.bf16.mxu1 %v3412_v1 }
 0x3af   :  { %3581 = vmatmul.mubr.bf16.vlgmr.msra.gmra.mrb[8].mxu1 %v3411_v63 }
 0x482   :  { %v4038_v2 = vpop.f32.mrb[8].mxu1 }
 0x483   :  { %v4039_v4 = vpop.f32.mrb[9].mxu1 }
 0x484   :  { %v4040_v5 = vadd.f32 %v4039_v4, %v4038_v2  ;;  %v4041_v6 = vpop.f32.mrb[10].mxu1 }
 0x485   :  { %v4042_v7 = vpop.f32.mrb[11].mxu1 }
 0x486   :  { %v3583_v8 = vadd.f32 %v4040_v5, %v4005_v3  ;;  %v4043_v9 = vadd.f32 %v4042_v7, %v4041_v6 }
 0x488   :  { %3589 = vst [vmem:[#allocation13] sm:$0xff] %v3583_v8  ;;  %v3586_v10 = vadd.f32 %v4043_v9, %v4005_v3 }
 0x48a   :  { %3590 = vst [vmem:[#allocation13 + $0x8] sm:$0xff] %v3586_v10 }
 0x48b   :  { %3595 = vsyncadd [#allocation4], 224  ;;  %s4911_s26 = smov [#allocation13]  }
 0x48c   :  { %s3596_s28 = sshll.u32 %s4911_s26, 4  ;;  %s3597_s28 = int_to_ptr.vmem [resolvable:$true] %s3596_s28 }
 0x48d   :  { %s4865_s4 = scalar_lea.vmem %s3597_s28, 32  ;;  %s4869_s29 = scalar_lea.vmem %s3597_s28, 256 }
 0x48e   :  { %p4866_p6 = scmp.ne.s32.totalorder %s3597_s28, %s4865_s4  ;;  %p4870_p7 = scmp.lt.s32.totalorder %s3597_s28, %s3597_s28 }
 0x48f   :  { %p4871_p8 = scmp.lt.s32.totalorder %s4869_s29, %s4865_s4 }
 0x491   :  { %p4872_p9 = por %p4871_p8, %p4870_p7 }
 0x493   :  { %p4873_p10 = pnand %p4872_p9, %p4866_p6 }
 0x495   :  { %4876 = shalt.err (!%p4873_p10)
}
 0x496   :  { %s4877_s12 = scalar_lea.hbm %s5282_s11, 32 }
 0x497   :  { %p4878_p11 = scmp.ne.s32.totalorder %s5282_s11, %s4877_s12  ;;  %p4881_p12 = scmp.lt.u32.totalorder %s4877_s12, %s5282_s11 }
 0x499   :  { %p4883_p13 = pnand %p4881_p12, %p4878_p11 }
 0x49b   :  { %4886 = shalt.err (!%p4883_p13)
}
 0x49c   :  { %s4912_s0 = smov 32   ;;  %s4913_s27 = smov 2  }
 0x49d   :  { %3602 = dma.vmem_to_hbm [thread:$0]  %s3597_s28, 32, %s5282_s11, [#allocation4], %s4912_s0, %s4912_s0, %s4913_s27  }
 0x49e   :  { %4895 = dma.done.wait [#allocation4], 256  }
 0x49f   :  { %4896 = vsyncadd [#allocation4], 4294967040 }
 0x4a0   :  { %3606 = vsyncpa [#allocation3], 1 }
 0x4a1   :  { %3607 = vsyncpa [#allocation6], 1 }
 0x4a2   :  { %3608 = vsyncpa [#allocation9], 1 }
 0x4a3   :  { %3609 = vsyncpa [#allocation12], 1 }
 0x4a4   :  { %3610 = vsyncpa [#allocation4], 1 }

</bundles_post_ra>
